<compile_context>
chip_gen: v5e
topology: v5e:2x2
jax: 0.10.0
libtpu: 0.0.40
codegen_flags: <defaults>
</compile_context>

<pallas_src>
import jax
import jax.numpy as jnp
import numpy as np
from jax import lax
from jax.experimental import pallas as pl
from jax.experimental.pallas import tpu as pltpu


def _round_up(x, m):
    return ((x + m - 1) // m) * m


def _make_mi_kernel(preterm, max_clip, nbins, tile, n_voxels, needs_mask):
    inv_v = 1.0 / float(n_voxels)

    def kernel(bc_ref, yt_ref, yp_ref,          # inputs
               pab_ref, pa_ref, pb_ref,         # outputs (per-batch)
               acc_pab, acc_pa, acc_pb):        # VMEM scratch accumulators
        t = pl.program_id(1)

        @pl.when(t == 0)
        def _init():
            acc_pab[...] = jnp.zeros_like(acc_pab)
            acc_pa[...] = jnp.zeros_like(acc_pa)
            acc_pb[...] = jnp.zeros_like(acc_pb)

        bc = bc_ref[...]                                        # (nbins, 1)
        yt = jnp.clip(yt_ref[0].astype(jnp.float32), 0.0, max_clip)   # (1, tile)
        yp = jnp.clip(yp_ref[0].astype(jnp.float32), 0.0, max_clip)   # (1, tile)

        # Gaussian soft-binning, lane-dense (nbins, tile) layout.
        da = yt - bc                                            # (nbins, tile)
        db = yp - bc
        wa = jnp.exp((-preterm) * (da * da))
        wb = jnp.exp((-preterm) * (db * db))
        wa = wa * (1.0 / jnp.sum(wa, axis=0, keepdims=True))    # normalize bins
        wb = wb * (1.0 / jnp.sum(wb, axis=0, keepdims=True))

        if needs_mask:
            # zero out padded voxel columns (after normalization so no 0/0)
            col = lax.broadcasted_iota(jnp.int32, (1, tile), 1) + t * tile
            valid = (col < n_voxels).astype(jnp.float32)
            wa = wa * valid
            wb = wb * valid

        # pab[i, j] += sum_v wa[i, v] * wb[j, v]   (MXU, contraction over lanes)
        acc_pab[...] += lax.dot_general(
            wa, wb, (((1,), (1,)), ((), ())),
            preferred_element_type=jnp.float32)
        acc_pa[...] += jnp.sum(wa, axis=1, keepdims=True)       # (nbins, 1)
        acc_pb[...] += jnp.sum(wb, axis=1, keepdims=True)

        @pl.when(t == pl.num_programs(1) - 1)
        def _finalize():
            pab_ref[0] = acc_pab[...] * inv_v
            pa_ref[0] = acc_pa[...] * inv_v
            pb_ref[0] = acc_pb[...] * inv_v

    return kernel


def mutual_information(y_true, y_pred, *, sigma_ratio=1.0, minval=0.0,
                       maxval=1.0, num_bin=32, max_tile=4096):
    """Pallas implementation of MutualInformation.forward (returns mean MI)."""
    assert y_true.shape == y_pred.shape
    N = y_true.shape[0]
    V = int(np.prod(y_true.shape[1:]))
    nbins = int(num_bin)

    # Bin centers / preterm exactly as the PyTorch module builds them.
    bin_centers = np.linspace(minval, maxval, num=nbins)
    sigma = float(np.mean(np.diff(bin_centers))) * sigma_ratio
    preterm = float(1.0 / (2.0 * sigma ** 2))
    bc = jnp.asarray(bin_centers.astype(np.float32)).reshape(nbins, 1)

    # Voxel tiling: lane-dense tiles (multiple of 128), padded if needed.
    tile = min(_round_up(V, 128), max_tile)
    n_t = pl.cdiv(V, tile)
    v_pad = n_t * tile

    yt = y_true.reshape(N, 1, V)
    yp = y_pred.reshape(N, 1, V)
    if v_pad != V:
        pad = ((0, 0), (0, 0), (0, v_pad - V))
        yt = jnp.pad(yt, pad)
        yp = jnp.pad(yp, pad)

    kernel = _make_mi_kernel(preterm, float(maxval), nbins, tile, V,
                             needs_mask=(v_pad != V))

    y_spec = pl.BlockSpec((1, 1, tile), lambda n, t: (n, 0, t))
    pab, pa, pb = pl.pallas_call(
        kernel,
        out_shape=(
            jax.ShapeDtypeStruct((N, nbins, nbins), jnp.float32),
            jax.ShapeDtypeStruct((N, nbins, 1), jnp.float32),
            jax.ShapeDtypeStruct((N, nbins, 1), jnp.float32),
        ),
        grid=(N, n_t),
        in_specs=[
            pl.BlockSpec((nbins, 1), lambda n, t: (0, 0)),   # bin centers
            y_spec,                                          # y_true tile
            y_spec,                                          # y_pred tile
        ],
        out_specs=(
            pl.BlockSpec((1, nbins, nbins), lambda n, t: (n, 0, 0)),
            pl.BlockSpec((1, nbins, 1), lambda n, t: (n, 0, 0)),
            pl.BlockSpec((1, nbins, 1), lambda n, t: (n, 0, 0)),
        ),
        scratch_shapes=[
            pltpu.VMEM((nbins, nbins), jnp.float32),
            pltpu.VMEM((nbins, 1), jnp.float32),
            pltpu.VMEM((nbins, 1), jnp.float32),
        ],
        compiler_params=pltpu.CompilerParams(
            dimension_semantics=("parallel", "arbitrary")),
    )(bc, yt, yp)

    # Tiny O(N * nbins^2) finalize in plain JAX.
    pa = pa[..., 0]                                    # (N, nbins)
    pb = pb[..., 0]
    papb = pa[:, :, None] * pb[:, None, :] + 1e-6      # (N, nbins, nbins)
    mi = jnp.sum(pab * jnp.log(pab / papb + 1e-6), axis=(1, 2))
    return jnp.mean(mi)


def mutual_information_ref(y_true, y_pred, *, sigma_ratio=1.0, minval=0.0,
                           maxval=1.0, num_bin=32):
    """Pure-JAX reference mirroring the PyTorch module semantics."""
    bin_centers = np.linspace(minval, maxval, num=num_bin)
    sigma = float(np.mean(np.diff(bin_centers))) * sigma_ratio
    preterm = 1.0 / (2.0 * sigma ** 2)
    vbc = jnp.asarray(bin_centers.astype(np.float32)).reshape(1, 1, num_bin)

    B = y_true.shape[0]
    yt = jnp.clip(y_true, 0.0, maxval).astype(jnp.float32).reshape(B, -1)[:, :, None]
    yp = jnp.clip(y_pred, 0.0, maxval).astype(jnp.float32).reshape(B, -1)[:, :, None]
    nb_voxels = yp.shape[1]

    I_a = jnp.exp(-preterm * jnp.square(yt - vbc))
    I_a = I_a / jnp.sum(I_a, axis=-1, keepdims=True)
    I_b = jnp.exp(-preterm * jnp.square(yp - vbc))
    I_b = I_b / jnp.sum(I_b, axis=-1, keepdims=True)

    pab = jnp.einsum('bvi,bvj->bij', I_a, I_b) / nb_voxels
    pa = jnp.mean(I_a, axis=1)                          # (B, nbins)
    pb = jnp.mean(I_b, axis=1)
    papb = pa[:, :, None] * pb[:, None, :] + 1e-6
    mi = jnp.sum(pab * jnp.log(pab / papb + 1e-6), axis=(1, 2))
    return jnp.mean(mi)


if __name__ == "__main__":
    key = jax.random.PRNGKey(0)
    k1, k2 = jax.random.split(key)
    shape = (2, 4, 16, 16)  # batch=2, channels=4, spatial=16x16 -> V=1024
    # Values mostly in [0, 1] with some out-of-range mass to exercise clamping.
    y_true = jax.random.uniform(k1, shape, jnp.float32, -0.2, 1.2)
    y_pred = jax.random.uniform(k2, shape, jnp.float32, -0.2, 1.2)

    out = jax.block_until_ready(mutual_information(y_true, y_pred))
    ref = jax.block_until_ready(mutual_information_ref(y_true, y_pred))

    np.testing.assert_allclose(np.asarray(out), np.asarray(ref),
                               rtol=1e-4, atol=1e-5)
    print("KERNEL_OK")
</pallas_src>

<mosaic_0001>
module attributes {stable_mosaic.version = 11 : i64} {
  func.func @kernel(%arg0: i32, %arg1: i32, %arg2: memref<32x1xf32, #tpu.memory_space<vmem>>, %arg3: memref<1x1x1024xf32, #tpu.memory_space<vmem>>, %arg4: memref<1x1x1024xf32, #tpu.memory_space<vmem>>, %arg5: memref<1x32x32xf32, #tpu.memory_space<vmem>>, %arg6: memref<1x32x1xf32, #tpu.memory_space<vmem>>, %arg7: memref<1x32x1xf32, #tpu.memory_space<vmem>>, %arg8: memref<32x32xf32, #tpu.memory_space<vmem>>, %arg9: memref<32x1xf32, #tpu.memory_space<vmem>>, %arg10: memref<32x1xf32, #tpu.memory_space<vmem>>) attributes {dimension_semantics = [#tpu.dimension_semantics<parallel>, #tpu.dimension_semantics<arbitrary>], iteration_bounds = array<i64: 2, 1>, scalar_prefetch = 0 : i64, scratch_operands = 3 : i64, tpu.core_type = #tpu.core_type<tc>, window_params = [{pipeline_mode = #tpu.pipeline_mode<synchronous>, transform_indices = @transform_0, window_bounds = array<i64: 32, 1>}, {transform_indices = @transform_1, window_bounds = array<i64: 1, 1, 1024>}, {transform_indices = @transform_2, window_bounds = array<i64: 1, 1, 1024>}, {transform_indices = @transform_3, window_bounds = array<i64: 1, 32, 32>}, {transform_indices = @transform_4, window_bounds = array<i64: 1, 32, 1>}, {transform_indices = @transform_5, window_bounds = array<i64: 1, 32, 1>}]} {
    %c0_i32 = arith.constant 0 : i32
    %0 = arith.cmpi eq, %arg1, %c0_i32 : i32
    %1 = arith.extui %0 : i1 to i32
    %c0_i32_0 = arith.constant 0 : i32
    %2 = arith.cmpi ne, %1, %c0_i32_0 : i32
    scf.if %2 {
      %cst_34 = arith.constant 0.000000e+00 : f32
      %59 = vector.broadcast %cst_34 : f32 to vector<32x32xf32>
      %c0_35 = arith.constant 0 : index
      %c0_36 = arith.constant 0 : index
      %60 = vector.load %arg8[%c0_35, %c0_36] : memref<32x32xf32, #tpu.memory_space<vmem>>, vector<32x32xf32>
      tpu.vector_store %arg8[%c0_35, %c0_36], %59 {strides = array<i32>} : memref<32x32xf32, #tpu.memory_space<vmem>>, vector<32x32xf32>,
      %cst_37 = arith.constant 0.000000e+00 : f32
      %61 = vector.broadcast %cst_37 : f32 to vector<32x1xf32>
      %c0_38 = arith.constant 0 : index
      %c0_39 = arith.constant 0 : index
      %62 = vector.load %arg9[%c0_38, %c0_39] : memref<32x1xf32, #tpu.memory_space<vmem>>, vector<32x1xf32>
      tpu.vector_store %arg9[%c0_38, %c0_39], %61 {strides = array<i32>} : memref<32x1xf32, #tpu.memory_space<vmem>>, vector<32x1xf32>,
      %cst_40 = arith.constant 0.000000e+00 : f32
      %63 = vector.broadcast %cst_40 : f32 to vector<32x1xf32>
      %c0_41 = arith.constant 0 : index
      %c0_42 = arith.constant 0 : index
      %64 = vector.load %arg10[%c0_41, %c0_42] : memref<32x1xf32, #tpu.memory_space<vmem>>, vector<32x1xf32>
      tpu.vector_store %arg10[%c0_41, %c0_42], %63 {strides = array<i32>} : memref<32x1xf32, #tpu.memory_space<vmem>>, vector<32x1xf32>,
    } else {
    }
    %c0 = arith.constant 0 : index
    %c0_1 = arith.constant 0 : index
    %3 = vector.load %arg2[%c0, %c0_1] : memref<32x1xf32, #tpu.memory_space<vmem>>, vector<32x1xf32>
    %c0_2 = arith.constant 0 : index
    %c0_3 = arith.constant 0 : index
    %c0_4 = arith.constant 0 : index
    %4 = vector.load %arg3[%c0_2, %c0_3, %c0_4] : memref<1x1x1024xf32, #tpu.memory_space<vmem>>, vector<1x1x1024xf32>
    %5 = vector.shape_cast %4 : vector<1x1x1024xf32> to vector<1x1024xf32>
    %cst = arith.constant 0.000000e+00 : f32
    %cst_5 = arith.constant 1.000000e+00 : f32
    %6 = vector.broadcast %cst : f32 to vector<1x1024xf32>
    %7 = arith.maximumf %6, %5 : vector<1x1024xf32>
    %8 = vector.broadcast %cst_5 : f32 to vector<1x1024xf32>
    %9 = arith.minimumf %8, %7 : vector<1x1024xf32>
    %c0_6 = arith.constant 0 : index
    %c0_7 = arith.constant 0 : index
    %c0_8 = arith.constant 0 : index
    %10 = vector.load %arg4[%c0_6, %c0_7, %c0_8] : memref<1x1x1024xf32, #tpu.memory_space<vmem>>, vector<1x1x1024xf32>
    %11 = vector.shape_cast %10 : vector<1x1x1024xf32> to vector<1x1024xf32>
    %cst_9 = arith.constant 0.000000e+00 : f32
    %cst_10 = arith.constant 1.000000e+00 : f32
    %12 = vector.broadcast %cst_9 : f32 to vector<1x1024xf32>
    %13 = arith.maximumf %12, %11 : vector<1x1024xf32>
    %14 = vector.broadcast %cst_10 : f32 to vector<1x1024xf32>
    %15 = arith.minimumf %14, %13 : vector<1x1024xf32>
    %16 = vector.broadcast %9 : vector<1x1024xf32> to vector<32x1024xf32>
    %17 = vector.broadcast %3 : vector<32x1xf32> to vector<32x1024xf32>
    %18 = arith.subf %16, %17 : vector<32x1024xf32>
    %19 = vector.broadcast %15 : vector<1x1024xf32> to vector<32x1024xf32>
    %20 = vector.broadcast %3 : vector<32x1xf32> to vector<32x1024xf32>
    %21 = arith.subf %19, %20 : vector<32x1024xf32>
    %22 = arith.mulf %18, %18 : vector<32x1024xf32>
    %cst_11 = arith.constant -4.805000e+02 : f32
    %23 = vector.broadcast %cst_11 : f32 to vector<32x1024xf32>
    %24 = arith.mulf %23, %22 : vector<32x1024xf32>
    %25 = math.exp %24 : vector<32x1024xf32>
    %26 = arith.mulf %21, %21 : vector<32x1024xf32>
    %cst_12 = arith.constant -4.805000e+02 : f32
    %27 = vector.broadcast %cst_12 : f32 to vector<32x1024xf32>
    %28 = arith.mulf %27, %26 : vector<32x1024xf32>
    %29 = math.exp %28 : vector<32x1024xf32>
    %cst_13 = arith.constant dense<0.000000e+00> : vector<1024xf32>
    %30 = vector.multi_reduction <add>, %25, %cst_13 [0] : vector<32x1024xf32> to vector<1024xf32>
    %31 = vector.shape_cast %30 : vector<1024xf32> to vector<1x1024xf32>
    %cst_14 = arith.constant 1.000000e+00 : f32
    %32 = vector.broadcast %cst_14 : f32 to vector<1x1024xf32>
    %33 = arith.divf %32, %31 : vector<1x1024xf32>
    %34 = vector.broadcast %33 : vector<1x1024xf32> to vector<32x1024xf32>
    %35 = arith.mulf %25, %34 : vector<32x1024xf32>
    %cst_15 = arith.constant dense<0.000000e+00> : vector<1024xf32>
    %36 = vector.multi_reduction <add>, %29, %cst_15 [0] : vector<32x1024xf32> to vector<1024xf32>
    %37 = vector.shape_cast %36 : vector<1024xf32> to vector<1x1024xf32>
    %cst_16 = arith.constant 1.000000e+00 : f32
    %38 = vector.broadcast %cst_16 : f32 to vector<1x1024xf32>
    %39 = arith.divf %38, %37 : vector<1x1024xf32>
    %40 = vector.broadcast %39 : vector<1x1024xf32> to vector<32x1024xf32>
    %41 = arith.mulf %29, %40 : vector<32x1024xf32>
    %c0_17 = arith.constant 0 : index
    %c0_18 = arith.constant 0 : index
    %42 = vector.load %arg8[%c0_17, %c0_18] : memref<32x32xf32, #tpu.memory_space<vmem>>, vector<32x32xf32>
    %cst_19 = arith.constant dense<0.000000e+00> : vector<32x32xf32>
    %43 = tpu.matmul %35, %41, %cst_19 {dimension_numbers = #tpu.dot_dimension_numbers<[1], [1], [0], [0], [0, 0, 1, 0], [], []>} : vector<32x1024xf32>, vector<32x1024xf32>, vector<32x32xf32> -> vector<32x32xf32>
    %44 = arith.addf %42, %43 : vector<32x32xf32>
    %c0_20 = arith.constant 0 : index
    %c0_21 = arith.constant 0 : index
    %45 = vector.load %arg8[%c0_20, %c0_21] : memref<32x32xf32, #tpu.memory_space<vmem>>, vector<32x32xf32>
    tpu.vector_store %arg8[%c0_20, %c0_21], %44 {strides = array<i32>} : memref<32x32xf32, #tpu.memory_space<vmem>>, vector<32x32xf32>,
    %c0_22 = arith.constant 0 : index
    %c0_23 = arith.constant 0 : index
    %46 = vector.load %arg9[%c0_22, %c0_23] : memref<32x1xf32, #tpu.memory_space<vmem>>, vector<32x1xf32>
    %cst_24 = arith.constant dense<0.000000e+00> : vector<32xf32>
    %47 = vector.multi_reduction <add>, %35, %cst_24 [1] : vector<32x1024xf32> to vector<32xf32>
    %48 = vector.shape_cast %47 : vector<32xf32> to vector<32x1xf32>
    %49 = arith.addf %46, %48 : vector<32x1xf32>
    %c0_25 = arith.constant 0 : index
    %c0_26 = arith.constant 0 : index
    %50 = vector.load %arg9[%c0_25, %c0_26] : memref<32x1xf32, #tpu.memory_space<vmem>>, vector<32x1xf32>
    tpu.vector_store %arg9[%c0_25, %c0_26], %49 {strides = array<i32>} : memref<32x1xf32, #tpu.memory_space<vmem>>, vector<32x1xf32>,
    %c0_27 = arith.constant 0 : index
    %c0_28 = arith.constant 0 : index
    %51 = vector.load %arg10[%c0_27, %c0_28] : memref<32x1xf32, #tpu.memory_space<vmem>>, vector<32x1xf32>
    %cst_29 = arith.constant dense<0.000000e+00> : vector<32xf32>
    %52 = vector.multi_reduction <add>, %41, %cst_29 [1] : vector<32x1024xf32> to vector<32xf32>
    %53 = vector.shape_cast %52 : vector<32xf32> to vector<32x1xf32>
    %54 = arith.addf %51, %53 : vector<32x1xf32>
    %c0_30 = arith.constant 0 : index
    %c0_31 = arith.constant 0 : index
    %55 = vector.load %arg10[%c0_30, %c0_31] : memref<32x1xf32, #tpu.memory_space<vmem>>, vector<32x1xf32>
    tpu.vector_store %arg10[%c0_30, %c0_31], %54 {strides = array<i32>} : memref<32x1xf32, #tpu.memory_space<vmem>>, vector<32x1xf32>,
    %c0_i32_32 = arith.constant 0 : i32
    %56 = arith.cmpi eq, %arg1, %c0_i32_32 : i32
    %57 = arith.extui %56 : i1 to i32
    %c0_i32_33 = arith.constant 0 : i32
    %58 = arith.cmpi ne, %57, %c0_i32_33 : i32
    scf.if %58 {
      %c0_34 = arith.constant 0 : index
      %c0_35 = arith.constant 0 : index
      %59 = vector.load %arg8[%c0_34, %c0_35] : memref<32x32xf32, #tpu.memory_space<vmem>>, vector<32x32xf32>
      %cst_36 = arith.constant 9.765625E-4 : f32
      %60 = vector.broadcast %cst_36 : f32 to vector<32x32xf32>
      %61 = arith.mulf %59, %60 : vector<32x32xf32>
      %c0_37 = arith.constant 0 : index
      %c0_38 = arith.constant 0 : index
      %c0_39 = arith.constant 0 : index
      %62 = vector.load %arg5[%c0_37, %c0_38, %c0_39] : memref<1x32x32xf32, #tpu.memory_space<vmem>>, vector<1x32x32xf32>
      %63 = vector.shape_cast %62 : vector<1x32x32xf32> to vector<32x32xf32>
      %64 = vector.shape_cast %61 : vector<32x32xf32> to vector<1x32x32xf32>
      tpu.vector_store %arg5[%c0_37, %c0_38, %c0_39], %64 {strides = array<i32>} : memref<1x32x32xf32, #tpu.memory_space<vmem>>, vector<1x32x32xf32>,
      %c0_40 = arith.constant 0 : index
      %c0_41 = arith.constant 0 : index
      %65 = vector.load %arg9[%c0_40, %c0_41] : memref<32x1xf32, #tpu.memory_space<vmem>>, vector<32x1xf32>
      %cst_42 = arith.constant 9.765625E-4 : f32
      %66 = vector.broadcast %cst_42 : f32 to vector<32x1xf32>
      %67 = arith.mulf %65, %66 : vector<32x1xf32>
      %c0_43 = arith.constant 0 : index
      %c0_44 = arith.constant 0 : index
      %c0_45 = arith.constant 0 : index
      %68 = vector.load %arg6[%c0_43, %c0_44, %c0_45] : memref<1x32x1xf32, #tpu.memory_space<vmem>>, vector<1x32x1xf32>
      %69 = vector.shape_cast %68 : vector<1x32x1xf32> to vector<32x1xf32>
      %70 = vector.shape_cast %67 : vector<32x1xf32> to vector<1x32x1xf32>
      tpu.vector_store %arg6[%c0_43, %c0_44, %c0_45], %70 {strides = array<i32>} : memref<1x32x1xf32, #tpu.memory_space<vmem>>, vector<1x32x1xf32>,
      %c0_46 = arith.constant 0 : index
      %c0_47 = arith.constant 0 : index
      %71 = vector.load %arg10[%c0_46, %c0_47] : memref<32x1xf32, #tpu.memory_space<vmem>>, vector<32x1xf32>
      %cst_48 = arith.constant 9.765625E-4 : f32
      %72 = vector.broadcast %cst_48 : f32 to vector<32x1xf32>
      %73 = arith.mulf %71, %72 : vector<32x1xf32>
      %c0_49 = arith.constant 0 : index
      %c0_50 = arith.constant 0 : index
      %c0_51 = arith.constant 0 : index
      %74 = vector.load %arg7[%c0_49, %c0_50, %c0_51] : memref<1x32x1xf32, #tpu.memory_space<vmem>>, vector<1x32x1xf32>
      %75 = vector.shape_cast %74 : vector<1x32x1xf32> to vector<32x1xf32>
      %76 = vector.shape_cast %73 : vector<32x1xf32> to vector<1x32x1xf32>
      tpu.vector_store %arg7[%c0_49, %c0_50, %c0_51], %76 {strides = array<i32>} : memref<1x32x1xf32, #tpu.memory_space<vmem>>, vector<1x32x1xf32>,
    } else {
    }
    return
  }
  func.func @transform_0(%arg0: i32, %arg1: i32) -> (i32, i32) {
    %c0_i32 = arith.constant 0 : i32
    %c0_i32_0 = arith.constant 0 : i32
    %c0_i32_1 = arith.constant 0 : i32
    return %c0_i32, %c0_i32_0 : i32, i32
  }
  func.func @transform_1(%arg0: i32, %arg1: i32) -> (i32, i32, i32) {
    %c0_i32 = arith.constant 0 : i32
    %c0_i32_0 = arith.constant 0 : i32
    return %arg0, %c0_i32, %arg1 : i32, i32, i32
  }
  func.func @transform_2(%arg0: i32, %arg1: i32) -> (i32, i32, i32) {
    %c0_i32 = arith.constant 0 : i32
    %c0_i32_0 = arith.constant 0 : i32
    return %arg0, %c0_i32, %arg1 : i32, i32, i32
  }
  func.func @transform_3(%arg0: i32, %arg1: i32) -> (i32, i32, i32) {
    %c0_i32 = arith.constant 0 : i32
    %c0_i32_0 = arith.constant 0 : i32
    %c0_i32_1 = arith.constant 0 : i32
    return %arg0, %c0_i32, %c0_i32_0 : i32, i32, i32
  }
  func.func @transform_4(%arg0: i32, %arg1: i32) -> (i32, i32, i32) {
    %c0_i32 = arith.constant 0 : i32
    %c0_i32_0 = arith.constant 0 : i32
    %c0_i32_1 = arith.constant 0 : i32
    return %arg0, %c0_i32, %c0_i32_0 : i32, i32, i32
  }
  func.func @transform_5(%arg0: i32, %arg1: i32) -> (i32, i32, i32) {
    %c0_i32 = arith.constant 0 : i32
    %c0_i32_0 = arith.constant 0 : i32
    %c0_i32_1 = arith.constant 0 : i32
    return %arg0, %c0_i32, %c0_i32_0 : i32, i32, i32
  }
}

</mosaic_0001>

<bundles_post_ra>
// kernel: tpu_custom_call.1
= control target key start
LH: loop header
LB: loop body
LE: loop exit
PB: predicated region body
PF: predicated region fallthrough
CT: control target
= control target key end

     0   :  { %11 = vsyncpa [#allocation6], 0  ;;  %s3156_s0 = inlined_call_operand.vmem [shape: f32[32,1], index: 0, kind: input, shape index: {}]   ;;  %s3157_s1 = inlined_call_operand.vmem [shape: f32[2,1,1024], index: 1, kind: input, shape index: {}]   ;;  %s3158_s2 = inlined_call_operand.vmem [shape: f32[2,1,1024], index: 2, kind: input, shape index: {}]   ;;  %s3159_s3 = inlined_call_operand.hbm [shape: f32[2,32,32], index: 3, kind: output, shape index: {0}]   ;;  %s3160_s4 = inlined_call_operand.vmem [shape: f32[2,32,1], index: 4, kind: output, shape index: {1}]   ;;  %s3161_s5 = inlined_call_operand.vmem [shape: f32[2,32,1], index: 5, kind: output, shape index: {2}]  }
   0x1   :  { %13 = vsyncpa [#allocation6 + $0x1], 0  ;;  %s2062_s18 = smov 0   ;;  %s2064_s19 = smov 0  }
   0x2   :  { %s2066_s20 = smov 0   ;;  %s2068_s21 = smov 0  }
   0x3   :  { %s2070_s22 = smov 0   ;;  %s2072_s23 = smov 0  }
   0x4 LB: > { %s1707_s24 = sadd.s32 4294967295, %s2026_s23   ;;  %s1708_s25 = sadd.s32 4294967294, %s2026_s23   ;;  %s2026_s23 = sphi %s2072_s23, %s19_s23   ;;  %s2022_s22 = sphi %s2070_s22, %s3273_s22   ;;  %s2018_s21 = sphi %s2068_s21, %s3272_s21   ;;  %s2014_s20 = sphi %s2066_s20, %s3271_s20   ;;  %s2010_s19 = sphi %s2064_s19, %s3270_s19   ;;  %s2006_s18 = sphi %s2062_s18, %s3269_s18  }
   0x5   : > { %s31_s26 = sadd.s32 1, %s2022_s22  ;;  %s115_s27 = sadd.s32 1, %s2014_s20 }
   0x6   : > { %p33_p0 = scmp.ge.s32.totalorder %s31_s26, 2  ;;  %p125_p1 = scmp.ne.s32.totalorder %s2014_s20, %s2010_s19 }
   0x7   : > { %p126_p2 = scmp.eq.s32.totalorder %s1707_s24, 1  ;;  %p131_p3 = scmp.ne.s32.totalorder %s2010_s19, %s2006_s18 }
   0x8   : > { %s3275_s26 = smov (%p33_p0, %s31_s26), 0  ;;  %p132_p5 = scmp.eq.s32.totalorder %s1708_s25, 1 }
   0x9   : > { %p2102_p4 = por %p126_p2, %p125_p1  ;;  %s112_s29 = ssub.s32 %s2022_s22, %s3275_s26 }
   0xa   : > { %p1711_p6 = scmp.ge.s32.totalorder %s2026_s23, 1  ;;  %p113_p7 = scmp.eq.s32.totalorder %s112_s29, 0 }
   0xb   : > { %p2109_p8 = por %p132_p5, %p131_p3  ;;  %p229_p9 = scmp.lt.s32.totalorder %s2026_s23, 3 }
   0xc   : > { %s2115_s6 = scalar_select %p113_p7, %s2014_s20, %s115_s27  }
   0xd   : > { %p230_p10 = pnand %p1711_p6, %p229_p9 }
   0xf   : > { %233 = sbr.rel (%p230_p10) target bundleno = 543 (0x21f), region = 32 }
  0x14   : > { %v326_v0 = vld [vmem:[%s3156_s0 + $0x10] sm:$0xff]  ;;  %v324_v1 = vld [vmem:[%s3156_s0] sm:$0xff]  ;;  %v2028_v2 = vmov 0   ;;  %v327_v3 = vld [vmem:[%s3156_s0 + $0x18] sm:$0xff]  ;;  %p279_p11 = scmp.lt.s32.totalorder %s2018_s21, 1  ;;  %s1726_s24 = sshll.u32 %s2018_s21, 5 }
  0x15   : > { %1787 = vset.pattern.permute.xlu1 %v2028_v2  ;;  %1786 = vset.pattern.permute.xlu0 %v2028_v2  ;;  %v325_v4 = vld [vmem:[%s3156_s0 + $0x8] sm:$0xff]  ;;  %s1559_s29 = scalar_lea.hbm %s3159_s3, %s1726_s24  ;;  %s1968_s13 = scalar_lea.hbm %s3159_s3, 64 }
  0x16   : > { %363 = vperm.xlu1 %1787, %v326_v0   ;;  %353 = vperm.xlu0 %1786, %v324_v1   ;;  %s2131_s15 = scalar_select %p279_p11, %s2018_s21, 1 }
  0x18   : > { %s1713_s16 = sshll.u32 %s2131_s15, 3  ;;  %s1724_s8 = sshll.u32 %s2131_s15, 5 }
  0x19   : > { %s294_s25 = scalar_lea.vmem %s3158_s2, %s1713_s16  ;;  %s285_s7 = scalar_lea.vmem %s3157_s1, %s1713_s16 }
  0x1a   : > { %v331_v5 = vld [vmem:[%s294_s25] sm:$0xff]  ;;  %s3058_s11 = scalar_lea.vmem %s3160_s4, %s1724_s8  ;;  %s3086_s14 = scalar_lea.vmem %s3161_s5, %s1724_s8 }
  0x1b   : > { %v332_v6 = vmax.f32 %v331_v5, 0.0  ;;  %s261_s15 = sand.u32 1, %s2010_s19   ;;  %s1562_s8 = sshll.u32 %s1559_s29, 4  ;;  %s1563_s8 = int_to_ptr.hbm [resolvable:$true] %s1562_s8 }
  0x1c   : > { %s1712_s16 = sshll.u32 %s261_s15, 5  ;;  %s1538_s21 = scalar_lea.sflag [#allocation6], %s261_s15 }
  0x1d   : > { %v2139_v7 = vmin.f32 %v332_v6, 1.0  ;;  %s3103_s17 = scalar_lea.vmem [#allocation5], %s1712_s16  ;;  %s1962_s9 = sshra.s32 %s1563_s8, 4  ;;  %s1963_s9 = int_to_ptr.hbm [resolvable:$true] %s1962_s9 }
  0x1e   : > { %368 = vperm.xlu1 %1787, %v327_v3   ;;  %358 = vperm.xlu0 %1786, %v325_v4   ;;  %s1964_s10 = scalar_lea.hbm %s1963_s9, 32  ;;  %p1969_p1 = scmp.lt.s32.totalorder %s1963_s9, %s3159_s3 }
  0x1f   : > { %v404_v8 = vperm.slane %v2139_v7, 0  ;;  %v405_v9 = vperm.slane %v2139_v7, 1  ;;  %v406_v10 = vperm.slane %v2139_v7, 2  ;;  %v2145_v11 = vperm.slane %v2139_v7, 3  ;;  %p1965_p12 = scmp.ne.s32.totalorder %s1963_s9, %s1964_s10  ;;  %p1970_p2 = scmp.lt.s32.totalorder %s1968_s13, %s1964_s10 }
  0x20   : > { %v2152_v14 = vperm.slane %v2139_v7, 4  ;;  %v2155_v15 = vperm.slane %v2139_v7, 5 }
  0x21   : > { %p1966_p13 = pnand %p1965_p12, %p2102_p4  ;;  %p1971_p3 = por %p1970_p2, %p1969_p1 }
  0x23   : > { %p1967_p0 = pneg %p1966_p13 }
  0x25   : > { %p1972_p5 = pnand %p1971_p3, %p1967_p0 }
  0x88   : > { %v2147_v12 = vpop.permute.xlu1 %363  ;;  %v2149_v13 = vpop.permute.xlu0 %353 }
  0x89   : > { %v420_v16 = vsub.f32 %v404_v8, %v2149_v13  ;;  %v436_v17 = vsub.f32 %v404_v8, %v2147_v12  ;;  %v421_v18 = vsub.f32 %v405_v9, %v2149_v13  ;;  %v437_v19 = vsub.f32 %v405_v9, %v2147_v12 }
  0x8a   : > { %v422_v20 = vsub.f32 %v406_v10, %v2149_v13  ;;  %v438_v21 = vsub.f32 %v406_v10, %v2147_v12  ;;  %v423_v22 = vsub.f32 %v2145_v11, %v2149_v13  ;;  %v439_v23 = vsub.f32 %v2145_v11, %v2147_v12 }
  0x8b   : > { %v580_v24 = vmul.f32 %v420_v16, %v420_v16  ;;  %v596_v25 = vmul.f32 %v436_v17, %v436_v17  ;;  %v581_v26 = vmul.f32 %v421_v18, %v421_v18  ;;  %v597_v27 = vmul.f32 %v437_v19, %v437_v19 }
  0x8c   : > { %v582_v28 = vmul.f32 %v422_v20, %v422_v20  ;;  %v598_v29 = vmul.f32 %v438_v21, %v438_v21  ;;  %v583_v30 = vmul.f32 %v423_v22, %v423_v22  ;;  %v599_v31 = vmul.f32 %v439_v23, %v439_v23 }
  0x8d   : > { %v612_v32 = vmul.f32 -480.5, %v580_v24  ;;  %v628_v33 = vmul.f32 -480.5, %v596_v25  ;;  %v613_v34 = vmul.f32 -480.5, %v581_v26  ;;  %v629_v35 = vmul.f32 -480.5, %v597_v27 }
  0x8e   : > { %v614_v36 = vmul.f32 -480.5, %v582_v28  ;;  %v630_v37 = vmul.f32 -480.5, %v598_v29  ;;  %v615_v38 = vmul.f32 -480.5, %v583_v30  ;;  %v631_v39 = vmul.f32 -480.5, %v599_v31 }
  0x8f   : > { %v644_v40 = vmul.f32 1.442695, %v612_v32  ;;  %v676_v41 = vmul.f32 1.442695, %v628_v33  ;;  %v646_v42 = vmul.f32 1.442695, %v613_v34  ;;  %v424_v43 = vsub.f32 %v2152_v14, %v2149_v13 }
  0x90   : > { %v2169_v44 = vpop.permute.xlu1 %368  ;;  %v2171_v45 = vpop.permute.xlu0 %358  ;;  %v678_v46 = vmul.f32 1.442695, %v629_v35  ;;  %v648_v47 = vmul.f32 1.442695, %v614_v36  ;;  %v680_v48 = vmul.f32 1.442695, %v630_v37  ;;  %v440_v49 = vsub.f32 %v2152_v14, %v2147_v12 }
  0x91   : > { %v428_v50 = vsub.f32 %v404_v8, %v2171_v45  ;;  %v444_v51 = vsub.f32 %v404_v8, %v2169_v44  ;;  %1788 = vpow2.f32 %v644_v40  ;;  %v429_v52 = vsub.f32 %v405_v9, %v2171_v45 }
  0x92   : > { %1790 = vpow2.f32 %v676_v41  ;;  %v445_v53 = vsub.f32 %v405_v9, %v2169_v44  ;;  %v430_v54 = vsub.f32 %v406_v10, %v2171_v45  ;;  %v446_v55 = vsub.f32 %v406_v10, %v2169_v44 }
  0x93   : > { %v588_v56 = vmul.f32 %v428_v50, %v428_v50  ;;  %v604_v57 = vmul.f32 %v444_v51, %v444_v51  ;;  %v589_v58 = vmul.f32 %v429_v52, %v429_v52  ;;  %1792 = vpow2.f32 %v646_v42 }
  0x94   : > { %v605_v59 = vmul.f32 %v445_v53, %v445_v53  ;;  %1794 = vpow2.f32 %v678_v46  ;;  %v590_v60 = vmul.f32 %v430_v54, %v430_v54  ;;  %v606_v61 = vmul.f32 %v446_v55, %v446_v55 }
  0x95   : > { %v620_v62 = vmul.f32 -480.5, %v588_v56  ;;  %v636_v63 = vmul.f32 -480.5, %v604_v57  ;;  %v621_v0 = vmul.f32 -480.5, %v589_v58  ;;  %1796 = vpow2.f32 %v648_v47 }
  0x96   : > { %v637_v1 = vmul.f32 -480.5, %v605_v59  ;;  %v622_v2 = vmul.f32 -480.5, %v590_v60  ;;  %v638_v3 = vmul.f32 -480.5, %v606_v61  ;;  %1798 = vpow2.f32 %v680_v48 }
  0x97   : > { %v2181_v4 = vpop.eup %1788  ;;  %v660_v5 = vmul.f32 1.442695, %v620_v62  ;;  %v692_v6 = vmul.f32 1.442695, %v636_v63  ;;  %v662_v8 = vmul.f32 1.442695, %v621_v0  ;;  %v431_v9 = vsub.f32 %v2145_v11, %v2171_v45 }
  0x98   : > { %v2185_v10 = vpop.eup %1790  ;;  %v694_v16 = vmul.f32 1.442695, %v637_v1  ;;  %v664_v17 = vmul.f32 1.442695, %v622_v2  ;;  %v696_v18 = vmul.f32 1.442695, %v638_v3  ;;  %v447_v19 = vsub.f32 %v2145_v11, %v2169_v44 }
  0x99   : > { %v2189_v20 = vpop.eup %1792  ;;  %1800 = vpow2.f32 %v660_v5  ;;  %v591_v21 = vmul.f32 %v431_v9, %v431_v9  ;;  %v650_v22 = vmul.f32 1.442695, %v615_v38  ;;  %v682_v23 = vmul.f32 1.442695, %v631_v39 }
  0x9a   : > { %v2191_v24 = vpop.eup %1794  ;;  %1802 = vpow2.f32 %v692_v6  ;;  %v607_v25 = vmul.f32 %v447_v19, %v447_v19  ;;  %v432_v26 = vsub.f32 %v2152_v14, %v2171_v45  ;;  %v448_v27 = vsub.f32 %v2152_v14, %v2169_v44 }
  0x9b   : > { %v2197_v28 = vpop.eup %1796  ;;  %1804 = vpow2.f32 %v662_v8  ;;  %v623_v11 = vmul.f32 -480.5, %v591_v21  ;;  %v584_v29 = vmul.f32 %v424_v43, %v424_v43  ;;  %v600_v30 = vmul.f32 %v440_v49, %v440_v49 }
  0x9c   : > { %v2199_v31 = vpop.eup %1798  ;;  %1806 = vpow2.f32 %v694_v16  ;;  %v639_v32 = vmul.f32 -480.5, %v607_v25  ;;  %v592_v33 = vmul.f32 %v432_v26, %v432_v26  ;;  %v608_v34 = vmul.f32 %v448_v27, %v448_v27 }
  0x9d   : > { %1808 = vpow2.f32 %v664_v17  ;;  %v666_v35 = vmul.f32 1.442695, %v623_v11  ;;  %v616_v36 = vmul.f32 -480.5, %v584_v29  ;;  %v632_v37 = vmul.f32 -480.5, %v600_v30 }
  0x9e   : > { %1810 = vpow2.f32 %v696_v18  ;;  %v698_v38 = vmul.f32 1.442695, %v639_v32  ;;  %v624_v39 = vmul.f32 -480.5, %v592_v33  ;;  %v640_v14 = vmul.f32 -480.5, %v608_v34 }
  0x9f   : > { %v2201_v40 = vpop.eup %1800  ;;  %1812 = vpow2.f32 %v650_v22  ;;  %v652_v41 = vmul.f32 1.442695, %v616_v36  ;;  %v684_v42 = vmul.f32 1.442695, %v632_v37  ;;  %v425_v43 = vsub.f32 %v2155_v15, %v2149_v13 }
  0xa0   : > { %v2205_v46 = vpop.eup %1802  ;;  %v932_v47 = vadd.f32 %v2201_v40, %v2181_v4  ;;  %1814 = vpow2.f32 %v666_v35  ;;  %v668_v48 = vmul.f32 1.442695, %v624_v39  ;;  %v700_v49 = vmul.f32 1.442695, %v640_v14 }
  0xa1   : > { %v2209_v50 = vpop.eup %1804  ;;  %1816 = vpow2.f32 %v682_v23  ;;  %v433_v51 = vsub.f32 %v2155_v15, %v2171_v45  ;;  %v441_v52 = vsub.f32 %v2155_v15, %v2147_v12  ;;  %v449_v53 = vsub.f32 %v2155_v15, %v2169_v44 }
  0xa2   : > { %v2217_v54 = vpop.eup %1806  ;;  %v933_v55 = vadd.f32 %v2185_v10, %v932_v47  ;;  %v941_v56 = vadd.f32 %v2209_v50, %v2189_v20  ;;  %1818 = vpow2.f32 %v698_v38  ;;  %v585_v57 = vmul.f32 %v425_v43, %v425_v43 }
  0xa3   : > { %v2222_v58 = vpop.eup %1808  ;;  %1820 = vpow2.f32 %v652_v41  ;;  %v593_v59 = vmul.f32 %v433_v51, %v433_v51  ;;  %v601_v60 = vmul.f32 %v441_v52, %v441_v52  ;;  %v609_v61 = vmul.f32 %v449_v53, %v449_v53 }
  0xa4   : > { %v2224_v62 = vpop.eup %1810  ;;  %v934_v63 = vadd.f32 %v2205_v46, %v933_v55  ;;  %v942_v15 = vadd.f32 %v2191_v24, %v941_v56  ;;  %v950_v0 = vadd.f32 %v2222_v58, %v2197_v28  ;;  %1822 = vpow2.f32 %v668_v48 }
  0xa5   : > { %v2230_v1 = vpop.eup %1812  ;;  %v617_v2 = vmul.f32 -480.5, %v585_v57  ;;  %v625_v3 = vmul.f32 -480.5, %v593_v59  ;;  %v633_v5 = vmul.f32 -480.5, %v601_v60  ;;  %1824 = vpow2.f32 %v684_v42 }
  0xa6   : > { %v2232_v6 = vpop.eup %1814  ;;  %v935_v8 = vrot.slane %v934_v63, 4  ;;  %v943_v9 = vadd.f32 %v2217_v54, %v942_v15  ;;  %v951_v16 = vadd.f32 %v2199_v31, %v950_v0  ;;  %v641_v19 = vmul.f32 -480.5, %v609_v61 }
  0xa7   : > { %v2236_v17 = vpop.eup %1816  ;;  %v959_v18 = vadd.f32 %v2232_v6, %v2230_v1  ;;  %v654_v21 = vmul.f32 1.442695, %v617_v2  ;;  %v670_v22 = vmul.f32 1.442695, %v625_v3  ;;  %1826 = vpow2.f32 %v700_v49 }
  0xa8   : > { %v2240_v23 = vpop.eup %1818  ;;  %v936_v25 = vadd.f32 %v935_v8, %v934_v63  ;;  %v944_v26 = vrot.slane %v943_v9, 4  ;;  %v952_v27 = vadd.f32 %v2224_v62, %v951_v16  ;;  %v686_v30 = vmul.f32 1.442695, %v633_v5 }
  0xa9   : > { %v2243_v11 = vpop.eup %1820  ;;  %v960_v29 = vadd.f32 %v2236_v17, %v959_v18  ;;  %1828 = vpow2.f32 %v654_v21  ;;  %v410_v32 = vperm.slane %v2139_v7, 6  ;;  %v702_v39 = vmul.f32 1.442695, %v641_v19 }
  0xaa   : > { %3185 = vst [vmem:[#allocation8_spill] sm:$0xff] %v2243_v11  ;;  %v2247_v33 = vpop.eup %1822  ;;  %v937_v34 = vrot.slane %v936_v25, 2  ;;  %v945_v35 = vadd.f32 %v944_v26, %v943_v9  ;;  %v953_v36 = vrot.slane %v952_v27, 4  ;;  %1830 = vpow2.f32 %v670_v22 }
  0xab   : > { %3186 = vst [vmem:[#allocation9_spill] sm:$0xff] %v2247_v33  ;;  %v961_v37 = vadd.f32 %v2240_v23, %v960_v29  ;;  %v968_v38 = vadd.f32 %v2247_v33, %v2243_v11  ;;  %v2252_v14 = vpop.eup %1824  ;;  %1832 = vpow2.f32 %v686_v30  ;;  %v426_v55 = vsub.f32 %v410_v32, %v2149_v13 }
  0xac   : > { %v938_v41 = vadd.f32 %v937_v34, %v936_v25  ;;  %v946_v42 = vrot.slane %v945_v35, 2  ;;  %v954_v43 = vadd.f32 %v953_v36, %v952_v27  ;;  %1834 = vpow2.f32 %v702_v39 }
  0xad   : > { %v962_v47 = vrot.slane %v961_v37, 4  ;;  %v969_v48 = vadd.f32 %v2252_v14, %v968_v38  ;;  %v2255_v49 = vpop.eup %1826  ;;  %v434_v0 = vsub.f32 %v410_v32, %v2171_v45  ;;  %v442_v8 = vsub.f32 %v410_v32, %v2147_v12 }
  0xae   : > { %v939_v51 = vrot.slane %v938_v41, 1  ;;  %v947_v52 = vadd.f32 %v946_v42, %v945_v35  ;;  %v955_v53 = vrot.slane %v954_v43, 2  ;;  %v450_v9 = vsub.f32 %v410_v32, %v2169_v44 }
  0xaf   : > { %v2258_v56 = vpop.eup %1828  ;;  %v963_v57 = vadd.f32 %v962_v47, %v961_v37  ;;  %v970_v59 = vadd.f32 %v2255_v49, %v969_v48  ;;  %v586_v16 = vmul.f32 %v426_v55, %v426_v55  ;;  %v594_v29 = vmul.f32 %v434_v0, %v434_v0 }
  0xb0   : > { %3187 = vst [vmem:[#allocation10_spill] sm:$0xff] %v2258_v56  ;;  %v2261_v60 = vpop.eup %1830  ;;  %v2263_v61 = vadd.f32 %v939_v51, %v938_v41  ;;  %v948_v63 = vrot.slane %v947_v52, 1  ;;  %v956_v15 = vadd.f32 %v955_v53, %v954_v43  ;;  %v602_v35 = vmul.f32 %v442_v8, %v442_v8 }
  0xb1   : > { %3188 = vst [vmem:[#allocation11_spill] sm:$0xff] %v2261_v60  ;;  %v964_v2 = vrot.slane %v963_v57, 2  ;;  %v971_v3 = vrot.slane %v970_v59, 4  ;;  %v977_v5 = vadd.f32 %v2261_v60, %v2258_v56  ;;  %v2271_v18 = vpop.eup %1832  ;;  %v610_v41 = vmul.f32 %v450_v9, %v450_v9 }
  0xb2   : > { %1836 = vrcp.f32 %v2263_v61  ;;  %v2273_v19 = vadd.f32 %v948_v63, %v947_v52  ;;  %v957_v21 = vrot.slane %v956_v15, 1  ;;  %v1015_v26 = vand.u32 2147483648, %v2263_v61  ;;  %v2277_v30 = vpop.eup %1834 }
  0xb3   : > { %v965_v22 = vadd.f32 %v964_v2, %v963_v57  ;;  %v972_v25 = vadd.f32 %v971_v3, %v970_v59  ;;  %v978_v27 = vadd.f32 %v2271_v18, %v977_v5  ;;  %v1013_v34 = vand.u32 2147483647, %v2263_v61 }
  0xb4   : > { %1838 = vrcp.f32 %v2273_v19  ;;  %v1030_v32 = vand.u32 2147483648, %v2273_v19  ;;  %v2282_v36 = vadd.f32 %v957_v21, %v956_v15  ;;  %vm1009_vm0 = vweird.f32 %v2263_v61 }
  0xb5   : > { %v966_v37 = vrot.slane %v965_v22, 1  ;;  %v973_v38 = vrot.slane %v972_v25, 2  ;;  %v979_v39 = vadd.f32 %v2277_v30, %v978_v27  ;;  %v618_v42 = vmul.f32 -480.5, %v586_v16 }
  0xb6   : > { %v1016_v47 = vor.u32 1.1754944e-38, %v1015_v26  ;;  %v1028_v48 = vand.u32 2147483647, %v2273_v19  ;;  %1840 = vrcp.f32 %v2282_v36  ;;  %v626_v51 = vmul.f32 -480.5, %v594_v29 }
  0xb7   : > { %vm2289_vm1 = vcmp.eq.f32.partialorder %v1013_v34, 8.507059e+37  ;;  %v1045_v55 = vand.u32 2147483648, %v2282_v36  ;;  %v2294_v57 = vadd.f32 %v966_v37, %v965_v22  ;;  %v974_v59 = vadd.f32 %v973_v38, %v972_v25 }
  0xb8   : > { %v1837_v43 = vpop.eup %1836  ;;  %vm1024_vm2 = vweird.f32 %v2273_v19  ;;  %v1031_v63 = vor.u32 1.1754944e-38, %v1030_v32  ;;  %v980_v15 = vrot.slane %v979_v39, 4  ;;  %v2297_v0 = vmul.f32 -480.5, %v602_v35 }
  0xb9   : > { %v1005_v52 = vmul.f32 %v1837_v43, %v2263_v61  ;;  %v1043_v5 = vand.u32 2147483647, %v2282_v36  ;;  %1842 = vrcp.f32 %v2294_v57  ;;  %v656_v8 = vmul.f32 1.442695, %v618_v42 }
  0xba   : > { %v1839_v2 = vpop.eup %1838  ;;  %vm2302_vm3 = vcmp.eq.f32.partialorder %v1028_v48, 8.507059e+37  ;;  %v1060_v21 = vand.u32 2147483648, %v2294_v57  ;;  %v975_v22 = vrot.slane %v974_v59, 1  ;;  %v2307_v25 = vmul.f32 -480.5, %v610_v41 }
  0xbb   : > { %v1006_v3 = vsub.f32 1.0, %v1005_v52  ;;  %v1020_v9 = vmul.f32 %v1839_v2, %v2273_v19  ;;  %vm1010_vm4 = vweird.f32 %v1837_v43  ;;  %vm1039_vm5 = vweird.f32 %v2282_v36 }
  0xbc   : > { %v1046_v27 = vor.u32 1.1754944e-38, %v1045_v55  ;;  %v981_v29 = vadd.f32 %v980_v15, %v979_v39  ;;  %v1841_v34 = vpop.eup %1840  ;;  %vm1025_vm6 = vweird.f32 %v1839_v2  ;;  %v1058_v35 = vand.u32 2147483647, %v2294_v57  ;;  %vm1011_vm8 = vmor %vm1009_vm0, %vm1010_vm4 }
  0xbd   : > { %v1007_v26 = vmul.f32 %v1837_v43, %v1006_v3  ;;  %v1021_v32 = vsub.f32 1.0, %v1020_v9  ;;  %v2311_v37 = vadd.f32 %v975_v22, %v974_v59  ;;  %v1035_v42 = vmul.f32 %v1841_v34, %v2282_v36  ;;  %vm1026_vm12 = vmor %vm1024_vm2, %vm1025_vm6 }
  0xbe   : > { %vm2314_vm7 = vcmp.eq.f32.partialorder %v1043_v5, 8.507059e+37  ;;  %v982_v41 = vrot.slane %v981_v29, 2  ;;  %1844 = vpow2.f32 %v656_v8  ;;  %vm1054_vm9 = vweird.f32 %v2294_v57 }
  0xbf   : > { %v1008_v38 = vadd.f32 %v1837_v43, %v1007_v26  ;;  %v1022_v39 = vmul.f32 %v1839_v2, %v1021_v32  ;;  %v1061_v52 = vor.u32 1.1754944e-38, %v1060_v21  ;;  %1846 = vrcp.f32 %v2311_v37  ;;  %v1843_v59 = vpop.eup %1842 }
  0xc0   : > { %v2322_v55 = vmul.f32 1.442695, %v626_v51  ;;  %v1036_v3 = vsub.f32 1.0, %v1035_v42  ;;  %vm1040_vm10 = vweird.f32 %v1841_v34  ;;  %v983_v5 = vadd.f32 %v982_v41, %v981_v29 }
  0xc1   : > { %v1012_v15 = vsel %vm1011_vm8, %v1837_v43, %v1008_v38  ;;  %v1023_v8 = vadd.f32 %v1839_v2, %v1022_v39  ;;  %v1050_v61 = vmul.f32 %v1843_v59, %v2294_v57  ;;  %vm2327_vm11 = vcmp.eq.f32.partialorder %v1058_v35, 8.507059e+37  ;;  %vm1041_vm14 = vmor %vm1039_vm5, %vm1040_vm10 }
  0xc2   : > { %v1017_v9 = vsel %vm2289_vm1, %v1016_v47, %v1012_v15  ;;  %v1073_v21 = vand.u32 2147483647, %v2311_v37  ;;  %v1037_v43 = vmul.f32 %v1841_v34, %v1036_v3  ;;  %vm1055_vm13 = vweird.f32 %v1843_v59 }
  0xc3   : > { %v1148_v51 = vmul.f32 %v2205_v46, %v1017_v9  ;;  %v1075_v53 = vand.u32 2147483648, %v2311_v37  ;;  %v1027_v47 = vsel %vm1026_vm12, %v1839_v2, %v1023_v8  ;;  %v1051_v26 = vsub.f32 1.0, %v1050_v61  ;;  %vm1056_vm0 = vmor %vm1054_vm9, %vm1055_vm13 }
  0xc4   : > { %v1140_v29 = vmul.f32 %v2185_v10, %v1017_v9  ;;  %v1132_v32 = vmul.f32 %v2201_v40, %v1017_v9  ;;  %v2339_v35 = vpop.eup %1844  ;;  %v1032_v46 = vsel %vm2302_vm3, %v1031_v63, %v1027_v47  ;;  %v1038_v38 = vadd.f32 %v1841_v34, %v1037_v43 }
  0xc5   : > { %3197 = vst [vmem:[#allocation12_spill] sm:$0xff] %v2339_v35  ;;  %1172 = vmatpush.xpose.msra.mxu0 %v1148_v51  ;;  %v1124_v19 = vmul.f32 %v2181_v4, %v1017_v9  ;;  %v984_v42 = vrot.slane %v983_v5, 1  ;;  %v1847_v41 = vpop.eup %1846  ;;  %v1149_v39 = vmul.f32 %v2217_v54, %v1032_v46  ;;  %v1052_v10 = vmul.f32 %v1843_v59, %v1051_v26 }
  0xc6   : > { %v1141_v40 = vmul.f32 %v2191_v24, %v1032_v46  ;;  %v1133_v2 = vmul.f32 %v2209_v50, %v1032_v46  ;;  %v1042_v15 = vsel %vm1041_vm14, %v1841_v34, %v1038_v38  ;;  %v1125_v16 = vmul.f32 %v2189_v20, %v1032_v46 }
  0xc7   : > { %v1065_v63 = vmul.f32 %v1847_v41, %v2311_v37  ;;  %vm1070_vm15 = vweird.f32 %v1847_v41  ;;  %1201 = vmatpush.xpose.msra.mxu1 %v1149_v39  ;;  %v1481_v4 = vadd.f32 %v1149_v39, %v1148_v51  ;;  %v1047_v54 = vsel %vm2314_vm7, %v1046_v27, %v1042_v15 }
  0xc8   : > { %v1053_v3 = vadd.f32 %v1843_v59, %v1052_v10  ;;  %v1472_v9 = vadd.f32 %v1141_v40, %v1140_v29  ;;  %v1150_v36 = vmul.f32 %v2224_v62, %v1047_v54  ;;  %v1142_v24 = vmul.f32 %v2199_v31, %v1047_v54 }
  0xc9   : > { %1173 = vmatpush.xpose.msra.mxu0 %v1140_v29  ;;  %v1463_v20 = vadd.f32 %v1133_v2, %v1132_v32  ;;  %v1134_v50 = vmul.f32 %v2222_v58, %v1047_v54  ;;  %v1454_v8 = vadd.f32 %v1125_v16, %v1124_v19  ;;  %v1126_v61 = vmul.f32 %v2197_v28, %v1047_v54 }
  0xca   : > { %v1057_v34 = vsel %vm1056_vm0, %v1843_v59, %v1053_v3  ;;  %v1066_v48 = vsub.f32 1.0, %v1065_v63  ;;  %1230 = vmatpush.xpose.msra.mxu2 %v1150_v36  ;;  %v1482_v27 = vadd.f32 %v1481_v4, %v1150_v36  ;;  %v1473_v51 = vadd.f32 %v1472_v9, %v1142_v24 }
  0xcb   : > { %v1062_v62 = vsel %vm2327_vm11, %v1061_v52, %v1057_v34  ;;  %v1464_v43 = vadd.f32 %v1463_v20, %v1134_v50  ;;  %1202 = vmatpush.xpose.msra.mxu1 %v1141_v40  ;;  %v1455_v58 = vadd.f32 %v1454_v8, %v1126_v61  ;;  %v2367_v26 = vadd.f32 %v984_v42, %v983_v5 }
  0xcc   : > { %v1151_v57 = vmul.f32 %v2240_v23, %v1062_v62  ;;  %v1143_v31 = vmul.f32 %v2236_v17, %v1062_v62  ;;  %v1135_v47 = vmul.f32 %v2232_v6, %v1062_v62  ;;  %v1127_v59 = vmul.f32 %v2230_v1, %v1062_v62 }
  0xcd   : > { %1174 = vmatpush.xpose.msra.mxu0 %v1132_v32  ;;  %v1067_v28 = vmul.f32 %v1847_v41, %v1066_v48  ;;  %1848 = vpow2.f32 %v2322_v55  ;;  %v688_v23 = vmul.f32 1.442695, %v2297_v0  ;;  %vm1069_vm1 = vweird.f32 %v2311_v37 }
  0xce   : > { %1259 = vmatpush.xpose.msra.mxu3 %v1151_v57  ;;  %v1483_v52 = vadd.f32 %v1482_v27, %v1151_v57  ;;  %v2370_v22 = vadd.f32 %v1473_v51, %v1143_v31  ;;  %v2372_v29 = vadd.f32 %v1464_v43, %v1135_v47  ;;  %1231 = vmatpush.xpose.msra.mxu2 %v1142_v24  ;;  %1850 = vrcp.f32 %v2367_v26  ;;  %vm1071_vm2 = vmor %vm1069_vm1, %vm1070_vm15  ;;  %v328_v27 = vld [vmem:[%s285_s7] sm:$0xff]  ;;  %s1560_s7 = sshll.u32 %s3103_s17, 4  ;;  %s1561_s7 = int_to_ptr.vmem [resolvable:$true] %s1560_s7 }
  0xcf   : > { %v2375_v17 = vadd.f32 %v1455_v58, %v1127_v59  ;;  %v1068_v6 = vadd.f32 %v1847_v41, %v1067_v28  ;;  %1203 = vmatpush.xpose.msra.mxu1 %v1133_v2  ;;  %v1076_v1 = vor.u32 1.1754944e-38, %v1075_v53  ;;  %1852 = vpow2.f32 %v688_v23 }
  0xd0   : > { %3198 = vst [vmem:[#allocation13_spill] sm:$0xff] %v2370_v22  ;;  %v704_v55 = vmul.f32 1.442695, %v2307_v25  ;;  %vm1074_vm3 = vcmp.eq.f32.partialorder %v1073_v21, 8.507059e+37  ;;  %v411_v0 = vperm.slane %v2139_v7, 7  ;;  %v1090_v9 = vand.u32 2147483648, %v2367_v26 }
  0xd1   : > { %3199 = vst [vmem:[#allocation14_spill] sm:$0xff] %v2372_v29  ;;  %1175 = vmatpush.xpose.msra.mxu0 %v1124_v19  ;;  %v1072_v5 = vsel %vm1071_vm2, %v1847_v41, %v1068_v6  ;;  %v1088_v8 = vand.u32 2147483647, %v2367_v26  ;;  %vm1084_vm5 = vweird.f32 %v2367_v26 }
  0xd2   : > { %3200 = vst [vmem:[#allocation15_spill] sm:$0xff] %v2375_v17  ;;  %1260 = vmatpush.xpose.msra.mxu3 %v1143_v31  ;;  %v2384_v32 = vsel %vm1074_vm3, %v1076_v1, %v1072_v5  ;;  %1854 = vpow2.f32 %v704_v55  ;;  %1232 = vmatpush.xpose.msra.mxu2 %v1134_v50  ;;  %v427_v38 = vsub.f32 %v411_v0, %v2149_v13  ;;  %v1091_v51 = vor.u32 1.1754944e-38, %v1090_v9 }
  0xd3   : > { %v2386_v46 = vpop.eup %1848  ;;  %v1152_v53 = vmul.f32 %v2255_v49, %v2384_v32  ;;  %v435_v25 = vsub.f32 %v411_v0, %v2171_v45  ;;  %v443_v19 = vsub.f32 %v411_v0, %v2147_v12  ;;  %1204 = vmatpush.xpose.msra.mxu1 %v1125_v16  ;;  %v451_v37 = vsub.f32 %v411_v0, %v2169_v44 }
  0xd4   : > { %3201 = vst [vmem:[#allocation16_spill] sm:$0xff] %v2386_v46  ;;  %v986_v7 = vadd.f32 %v2386_v46, %v2339_v35  ;;  %v1851_v21 = vpop.eup %1850  ;;  %v587_v41 = vmul.f32 %v427_v38, %v427_v38  ;;  %vm1089_vm7 = vcmp.eq.f32.partialorder %v1088_v8, 8.507059e+37 }
  0xd5   : > { %1288 = vmatpush.xpose.msrb.mxu0 %v1152_v53  ;;  %v1484_v42 = vadd.f32 %v1483_v52, %v1152_v53  ;;  %v595_v39 = vmul.f32 %v435_v25, %v435_v25  ;;  %v603_v10 = vmul.f32 %v443_v19, %v443_v19  ;;  %v2396_v49 = vpop.eup %1852  ;;  %v1080_v40 = vmul.f32 %v1851_v21, %v2367_v26 }
  0xd6   : > { %1261 = vmatpush.xpose.msra.mxu3 %v1135_v47  ;;  %v611_v2 = vmul.f32 %v451_v37, %v451_v37  ;;  %1233 = vmatpush.xpose.msra.mxu2 %v1126_v61  ;;  %v987_v15 = vadd.f32 %v2396_v49, %v986_v7  ;;  %v619_v16 = vmul.f32 -480.5, %v587_v41  ;;  %vm1085_vm4 = vweird.f32 %v1851_v21 }
  0xd7   : > { %v627_v63 = vmul.f32 -480.5, %v595_v39  ;;  %v635_v4 = vmul.f32 -480.5, %v603_v10  ;;  %v1081_v3 = vsub.f32 1.0, %v1080_v40  ;;  %vm1086_vm6 = vmor %vm1084_vm5, %vm1085_vm4  ;;  %v329_v47 = vmax.f32 %v328_v27, 0.0 }
  0xd8   : > { %v2400_v54 = vpop.eup %1854  ;;  %v643_v24 = vmul.f32 -480.5, %v611_v2  ;;  %v658_v20 = vmul.f32 1.442695, %v619_v16 }
  0xd9   : > { %v988_v36 = vadd.f32 %v2400_v54, %v987_v15  ;;  %v674_v50 = vmul.f32 1.442695, %v627_v63  ;;  %v1082_v34 = vmul.f32 %v1851_v21, %v1081_v3  ;;  %v690_v61 = vmul.f32 1.442695, %v635_v4 }
  0xda   : > { %1262 = vmatpush.xpose.msra.mxu3 %v1127_v59  ;;  %1856 = vpow2.f32 %v658_v20  ;;  %v706_v57 = vmul.f32 1.442695, %v643_v24  ;;  %v330_v1 = vmin.f32 %v329_v47, 1.0 }
  0xdb   : > { %v989_v48 = vrot.slane %v988_v36, 4  ;;  %v1083_v62 = vadd.f32 %v1851_v21, %v1082_v34  ;;  %1858 = vpow2.f32 %v674_v50 }
  0xdc   : > { %1860 = vpow2.f32 %v690_v61  ;;  %v336_v19 = vperm.slane %v330_v1, 1  ;;  %v337_v7 = vperm.slane %v330_v1, 2  ;;  %v338_v37 = vperm.slane %v330_v1, 3 }
  0xdd   : > { %v990_v43 = vadd.f32 %v989_v48, %v988_v36  ;;  %v1087_v31 = vsel %vm1086_vm6, %v1851_v21, %v1083_v62  ;;  %1862 = vpow2.f32 %v706_v57  ;;  %v340_v41 = vperm.slane %v330_v1, 5 }
  0xde   : > { %v2411_v58 = vsel %vm1089_vm7, %v1091_v51, %v1087_v31  ;;  %v341_v39 = vperm.slane %v330_v1, 6  ;;  %v342_v10 = vperm.slane %v330_v1, 7  ;;  %v372_v15 = vsub.f32 %v336_v19, %v2149_v13 }
  0xdf   : > { %v991_v59 = vrot.slane %v990_v43, 2  ;;  %v1153_v28 = vmul.f32 %v2277_v30, %v2411_v58  ;;  %v335_v30 = vperm.slane %v330_v1, 0  ;;  %v373_v16 = vsub.f32 %v337_v7, %v2149_v13 }
  0xe0   : > { %v2415_v52 = vpop.eup %1856  ;;  %v374_v63 = vsub.f32 %v338_v37, %v2149_v13  ;;  %v376_v9 = vsub.f32 %v340_v41, %v2149_v13  ;;  %v377_v36 = vsub.f32 %v341_v39, %v2149_v13  ;;  %v378_v20 = vsub.f32 %v342_v10, %v2149_v13 }
  0xe1   : > { %3202 = vst [vmem:[#allocation17_spill] sm:$0xff] %v2415_v52  ;;  %v992_v23 = vadd.f32 %v991_v59, %v990_v43  ;;  %v2417_v26 = vpop.eup %1858  ;;  %1317 = vmatpush.xpose.msrb.mxu1 %v1153_v28  ;;  %v2419_v6 = vadd.f32 %v1484_v42, %v1153_v28  ;;  %v339_v42 = vperm.slane %v330_v1, 4  ;;  %v371_v2 = vsub.f32 %v335_v30, %v2149_v13 }
  0xe2   : > { %3203 = vst [vmem:[#allocation18_spill] sm:$0xff] %v2417_v26  ;;  %v995_v5 = vadd.f32 %v2417_v26, %v2415_v52  ;;  %v2423_v0 = vpop.eup %1860  ;;  %v379_v50 = vsub.f32 %v335_v30, %v2171_v45  ;;  %v380_v34 = vsub.f32 %v336_v19, %v2171_v45  ;;  %v381_v8 = vsub.f32 %v337_v7, %v2171_v45 }
  0xe3   : > { %3204 = vst [vmem:[#allocation19_spill] sm:$0xff] %v2419_v6  ;;  %v993_v55 = vrot.slane %v992_v23, 1  ;;  %v2426_v25 = vpop.eup %1862  ;;  %v375_v3 = vsub.f32 %v339_v42, %v2149_v13  ;;  %v382_v27 = vsub.f32 %v338_v37, %v2171_v45  ;;  %v383_v62 = vsub.f32 %v339_v42, %v2171_v45 }
  0xe4   : > { %v996_v38 = vadd.f32 %v2423_v0, %v995_v5  ;;  %v384_v51 = vsub.f32 %v340_v41, %v2171_v45  ;;  %v385_v43 = vsub.f32 %v341_v39, %v2171_v45  ;;  %v386_v57 = vsub.f32 %v342_v10, %v2171_v45 }
  0xe5   : > { %v994_v53 = vadd.f32 %v993_v55, %v992_v23  ;;  %v387_v13 = vsub.f32 %v335_v30, %v2147_v12  ;;  %v388_v59 = vsub.f32 %v336_v19, %v2147_v12  ;;  %v389_v28 = vsub.f32 %v337_v7, %v2147_v12 }
  0xe6   : > { %v997_v21 = vadd.f32 %v2426_v25, %v996_v38  ;;  %v2449_v1 = vsub.f32 %v338_v37, %v2147_v12  ;;  %v2452_v55 = vsub.f32 %v339_v42, %v2147_v12  ;;  %v2455_v5 = vsub.f32 %v340_v41, %v2147_v12 }
  0xe7   : > { %1864 = vrcp.f32 %v994_v53  ;;  %v1105_v23 = vand.u32 2147483648, %v994_v53  ;;  %v1103_v45 = vand.u32 2147483647, %v994_v53  ;;  %vm1099_vm9 = vweird.f32 %v994_v53 }
  0xe8   : > { %v998_v40 = vrot.slane %v997_v21, 4  ;;  %v2475_v17 = vsub.f32 %v338_v37, %v2169_v44  ;;  %v452_v37 = vmul.f32 %v371_v2, %v371_v2  ;;  %v460_v52 = vmul.f32 %v379_v50, %v379_v50 }
  0xe9   : > { %v1106_v29 = vor.u32 1.1754944e-38, %v1105_v23  ;;  %vm1104_vm11 = vcmp.eq.f32.partialorder %v1103_v45, 8.507059e+37  ;;  %v453_v23 = vmul.f32 %v372_v15, %v372_v15  ;;  %v458_v45 = vmul.f32 %v377_v36, %v377_v36 }
  0xea   : > { %v999_v4 = vadd.f32 %v998_v40, %v997_v21  ;;  %v2458_v40 = vsub.f32 %v341_v39, %v2147_v12  ;;  %v466_v2 = vmul.f32 %v385_v43, %v385_v43  ;;  %v484_v15 = vmul.f32 -480.5, %v452_v37 }
  0xeb   : > { %v485_v35 = vmul.f32 -480.5, %v453_v23  ;;  %v468_v11 = vmul.f32 %v387_v13, %v387_v13  ;;  %v470_v36 = vmul.f32 %v389_v28, %v389_v28  ;;  %v492_v13 = vmul.f32 -480.5, %v460_v52 }
  0xec   : > { %v1000_v48 = vrot.slane %v999_v4, 2 }
  0xed   : > { %v1865_v24 = vpop.eup %1864  ;;  %v518_v43 = vmul.f32 1.442695, %v485_v35 }
  0xee   : > { %v1095_v61 = vmul.f32 %v1865_v24, %v994_v53  ;;  %v1001_v47 = vadd.f32 %v1000_v48, %v999_v4  ;;  %vm1100_vm8 = vweird.f32 %v1865_v24  ;;  %v2461_v4 = vsub.f32 %v342_v10, %v2147_v12 }
  0xef   : > { %v2467_v48 = vsub.f32 %v336_v19, %v2169_v44  ;;  %vm1101_vm10 = vmor %vm1099_vm9, %vm1100_vm8  ;;  %v2478_v12 = vsub.f32 %v339_v42, %v2169_v44  ;;  %v2485_v53 = vsub.f32 %v341_v39, %v2169_v44  ;;  %v462_v39 = vmul.f32 %v381_v8, %v381_v8 }
  0xf0   : > { %v1096_v31 = vsub.f32 1.0, %v1095_v61  ;;  %v1002_v21 = vrot.slane %v1001_v47, 1  ;;  %v2464_v61 = vsub.f32 %v335_v30, %v2169_v44  ;;  %v2481_v30 = vsub.f32 %v340_v41, %v2169_v44 }
  0xf1   : > { %v454_v41 = vmul.f32 %v373_v16, %v373_v16 }
  0xf2   : > { %v1097_v38 = vmul.f32 %v1865_v24, %v1096_v31  ;;  %v2469_v22 = vadd.f32 %v1002_v21, %v1001_v47  ;;  %v2472_v31 = vsub.f32 %v337_v7, %v2169_v44  ;;  %v2490_v47 = vsub.f32 %v342_v10, %v2169_v44 }
  0xf3   : > { %v459_v21 = vmul.f32 %v378_v20, %v378_v20  ;;  %v464_v44 = vmul.f32 %v383_v62, %v383_v62  ;;  %v465_v10 = vmul.f32 %v384_v51, %v384_v51  ;;  %v486_v16 = vmul.f32 -480.5, %v454_v41 }
  0xf4   : > { %v1098_v6 = vadd.f32 %v1865_v24, %v1097_v38  ;;  %1866 = vrcp.f32 %v2469_v22  ;;  %v455_v38 = vmul.f32 %v374_v63, %v374_v63  ;;  %vm1114_vm12 = vweird.f32 %v2469_v22 }
  0xf5   : > { %v1118_v50 = vand.u32 2147483647, %v2469_v22  ;;  %v490_v62 = vmul.f32 -480.5, %v458_v45  ;;  %v516_v51 = vmul.f32 1.442695, %v484_v15 }
  0xf6   : > { %v1102_v19 = vsel %vm1101_vm10, %v1865_v24, %v1098_v6  ;;  %v456_v6 = vmul.f32 %v375_v3, %v375_v3  ;;  %v457_v24 = vmul.f32 %v376_v9, %v376_v9  ;;  %v487_v63 = vmul.f32 -480.5, %v455_v38 }
  0xf7   : > { %v2487_v7 = vsel %vm1104_vm11, %v1106_v29, %v1102_v19  ;;  %v461_v29 = vmul.f32 %v380_v34, %v380_v34  ;;  %v463_v19 = vmul.f32 %v382_v27, %v382_v27  ;;  %v469_v9 = vmul.f32 %v388_v59, %v388_v59 }
  0xf8   : > { %v2494_v42 = vmul.f32 %v2400_v54, %v2487_v7  ;;  %v467_v54 = vmul.f32 %v386_v57, %v386_v57  ;;  %v488_v20 = vmul.f32 -480.5, %v456_v6  ;;  %v1120_v34 = vand.u32 2147483648, %v2469_v22 }
  0xf9   : > { %v489_v8 = vmul.f32 -480.5, %v457_v24  ;;  %v491_v57 = vmul.f32 -480.5, %v459_v21  ;;  %v520_v37 = vmul.f32 1.442695, %v486_v16  ;;  %v522_v23 = vmul.f32 1.442695, %v487_v63 }
  0xfa   : > { %3205 = vst [vmem:[#allocation20_spill] sm:$0xff] %v2494_v42  ;;  %1346 = vmatpush.xpose.msrb.mxu2 %v2494_v42  ;;  %v1867_v56 = vpop.eup %1866  ;;  %1868 = vpow2.f32 %v516_v51  ;;  %v524_v59 = vmul.f32 1.442695, %v488_v20  ;;  %vm2501_vm14 = vcmp.eq.f32.partialorder %v1118_v50, 8.507059e+37  ;;  %v493_v38 = vmul.f32 -480.5, %v461_v29 }
  0xfb   : > { %v1110_v3 = vmul.f32 %v1867_v56, %v2469_v22  ;;  %vm1115_vm13 = vweird.f32 %v1867_v56  ;;  %1870 = vpow2.f32 %v518_v43  ;;  %v526_v6 = vmul.f32 1.442695, %v489_v8 }
  0xfc   : > { %1872 = vpow2.f32 %v520_v37  ;;  %v528_v45 = vmul.f32 1.442695, %v490_v62  ;;  %vm1116_vm15 = vmor %vm1114_vm12, %vm1115_vm13  ;;  %v1121_v35 = vor.u32 1.1754944e-38, %v1120_v34  ;;  %v495_v52 = vmul.f32 -480.5, %v463_v19 }
  0xfd   : > { %v1111_v27 = vsub.f32 1.0, %v1110_v3  ;;  %v494_v3 = vmul.f32 -480.5, %v462_v39  ;;  %1874 = vpow2.f32 %v522_v23  ;;  %v530_v21 = vmul.f32 1.442695, %v491_v57 }
  0xfe   : > { %v496_v16 = vmul.f32 -480.5, %v464_v44  ;;  %1876 = vpow2.f32 %v524_v59  ;;  %v532_v63 = vmul.f32 1.442695, %v492_v13  ;;  %v497_v20 = vmul.f32 -480.5, %v465_v10 }
  0xff   : > { %v1112_v41 = vmul.f32 %v1867_v56, %v1111_v27  ;;  %1878 = vpow2.f32 %v526_v6  ;;  %v534_v39 = vmul.f32 1.442695, %v493_v38  ;;  %v498_v19 = vmul.f32 -480.5, %v466_v2 }
 0x100   : > { %v2511_v50 = vpop.eup %1868  ;;  %1880 = vpow2.f32 %v528_v45  ;;  %v536_v34 = vmul.f32 1.442695, %v494_v3  ;;  %v471_v44 = vmul.f32 %v2449_v1, %v2449_v1  ;;  %v499_v8 = vmul.f32 -480.5, %v467_v54 }
 0x101   : > { %v1113_v24 = vadd.f32 %v1867_v56, %v1112_v41  ;;  %1882 = vpow2.f32 %v530_v21  ;;  %v538_v27 = vmul.f32 1.442695, %v495_v52  ;;  %v472_v62 = vmul.f32 %v2452_v55, %v2452_v55 }
 0x102   : > { %1884 = vpow2.f32 %v532_v63  ;;  %v540_v2 = vmul.f32 1.442695, %v496_v16  ;;  %v473_v43 = vmul.f32 %v2455_v5, %v2455_v5  ;;  %v501_v57 = vmul.f32 -480.5, %v469_v9 }
 0x103   : > { %v1117_v15 = vsel %vm1116_vm15, %v1867_v56, %v1113_v24  ;;  %v2517_v56 = vpop.eup %1870  ;;  %1886 = vpow2.f32 %v534_v39  ;;  %v542_v1 = vmul.f32 1.442695, %v497_v20  ;;  %v474_v13 = vmul.f32 %v2458_v40, %v2458_v40 }
 0x104   : > { %v2509_v29 = vsel %vm2501_vm14, %v1121_v35, %v1117_v15  ;;  %v2521_v10 = vpop.eup %1872  ;;  %v502_v37 = vmul.f32 -480.5, %v470_v36  ;;  %1888 = vpow2.f32 %v536_v34  ;;  %v544_v23 = vmul.f32 1.442695, %v498_v19 }
 0x105   : > { %v2515_v22 = vmul.f32 %v2426_v25, %v2509_v29  ;;  %v500_v25 = vmul.f32 -480.5, %v468_v11  ;;  %v2526_v51 = vpop.eup %1874  ;;  %v475_v11 = vmul.f32 %v2461_v4, %v2461_v4  ;;  %v503_v41 = vmul.f32 -480.5, %v471_v44 }
 0x106   : > { %v2530_v54 = vpop.eup %1876  ;;  %1890 = vpow2.f32 %v538_v27  ;;  %v546_v59 = vmul.f32 1.442695, %v499_v8  ;;  %v476_v9 = vmul.f32 %v2464_v61, %v2464_v61  ;;  %v504_v28 = vmul.f32 -480.5, %v472_v62 }
 0x107   : > { %3208 = vst [vmem:[#allocation21_spill] sm:$0xff] %v2515_v22  ;;  %1375 = vmatpush.xpose.msrb.mxu3 %v2515_v22  ;;  %v2534_v55 = vpop.eup %1878  ;;  %1892 = vpow2.f32 %v540_v2  ;;  %v548_v38 = vmul.f32 1.442695, %v500_v25  ;;  %v477_v36 = vmul.f32 %v2467_v48, %v2467_v48  ;;  %v505_v6 = vmul.f32 -480.5, %v473_v43 }
 0x108   : > { %3209 = vst [vmem:[#allocation22_spill] sm:$0xff] %v2534_v55  ;;  %v2538_v5 = vpop.eup %1880  ;;  %1894 = vpow2.f32 %v542_v1  ;;  %v550_v24 = vmul.f32 1.442695, %v501_v57  ;;  %v478_v3 = vmul.f32 %v2472_v31, %v2472_v31  ;;  %v506_v45 = vmul.f32 -480.5, %v474_v13 }
 0x109   : > { %3210 = vst [vmem:[#allocation23_spill] sm:$0xff] %v2538_v5  ;;  %v2542_v40 = vpop.eup %1882  ;;  %1896 = vpow2.f32 %v544_v23  ;;  %v552_v35 = vmul.f32 1.442695, %v502_v37  ;;  %v479_v52 = vmul.f32 %v2475_v17, %v2475_v17  ;;  %v507_v21 = vmul.f32 -480.5, %v475_v11 }
 0x10a   : > { %3211 = vst [vmem:[#allocation24_spill] sm:$0xff] %v2542_v40  ;;  %v2546_v4 = vpop.eup %1884  ;;  %1898 = vpow2.f32 %v546_v59  ;;  %v554_v15 = vmul.f32 1.442695, %v503_v41  ;;  %v480_v16 = vmul.f32 %v2478_v12, %v2478_v12  ;;  %v508_v63 = vmul.f32 -480.5, %v476_v9 }
 0x10b   : > { %3212 = vst [vmem:[#allocation25_spill] sm:$0xff] %v2546_v4  ;;  %v2550_v61 = vpop.eup %1886  ;;  %1900 = vpow2.f32 %v548_v38  ;;  %v556_v20 = vmul.f32 1.442695, %v504_v28  ;;  %v481_v39 = vmul.f32 %v2481_v30, %v2481_v30  ;;  %v509_v19 = vmul.f32 -480.5, %v477_v36 }
 0x10c   : > { %3213 = vst [vmem:[#allocation26_spill] sm:$0xff] %v2550_v61  ;;  %v2554_v48 = vpop.eup %1888  ;;  %1902 = vpow2.f32 %v550_v24  ;;  %v558_v34 = vmul.f32 1.442695, %v505_v6  ;;  %v482_v44 = vmul.f32 %v2485_v53, %v2485_v53  ;;  %v510_v8 = vmul.f32 -480.5, %v478_v3 }
 0x10d   : > { %3214 = vst [vmem:[#allocation27_spill] sm:$0xff] %v2554_v48  ;;  %v2558_v31 = vpop.eup %1890  ;;  %1904 = vpow2.f32 %v552_v35  ;;  %v560_v27 = vmul.f32 1.442695, %v506_v45  ;;  %v483_v62 = vmul.f32 %v2490_v47, %v2490_v47  ;;  %v511_v25 = vmul.f32 -480.5, %v479_v52 }
 0x10e   : > { %3215 = vst [vmem:[#allocation28_spill] sm:$0xff] %v2558_v31  ;;  %v2562_v17 = vpop.eup %1892  ;;  %1906 = vpow2.f32 %v554_v15  ;;  %v562_v2 = vmul.f32 1.442695, %v507_v21  ;;  %v512_v43 = vmul.f32 -480.5, %v480_v16  ;;  %v564_v57 = vmul.f32 1.442695, %v508_v63 }
 0x10f   : > { %3216 = vst [vmem:[#allocation29_spill] sm:$0xff] %v2562_v17  ;;  %v2566_v12 = vpop.eup %1894  ;;  %1908 = vpow2.f32 %v556_v20  ;;  %v513_v13 = vmul.f32 -480.5, %v481_v39  ;;  %v566_v53 = vmul.f32 1.442695, %v509_v19  ;;  %v514_v23 = vmul.f32 -480.5, %v482_v44 }
 0x110   : > { %3217 = vst [vmem:[#allocation30_spill] sm:$0xff] %v2566_v12  ;;  %v2570_v30 = vpop.eup %1896  ;;  %1910 = vpow2.f32 %v558_v34  ;;  %v568_v11 = vmul.f32 1.442695, %v510_v8  ;;  %v515_v47 = vmul.f32 -480.5, %v483_v62  ;;  %v570_v59 = vmul.f32 1.442695, %v511_v25 }
 0x111   : > { %3218 = vst [vmem:[#allocation31_spill] sm:$0xff] %v2570_v30  ;;  %v2572_v1 = vpop.eup %1898  ;;  %1912 = vpow2.f32 %v560_v27  ;;  %v708_v9 = vadd.f32 %v2546_v4, %v2511_v50  ;;  %v572_v38 = vmul.f32 1.442695, %v512_v43  ;;  %v717_v36 = vadd.f32 %v2550_v61, %v2517_v56 }
 0x112   : > { %3219 = vst [vmem:[#allocation32_spill] sm:$0xff] %v2572_v1  ;;  %v2574_v37 = vpop.eup %1900  ;;  %1914 = vpow2.f32 %v562_v2  ;;  %v574_v24 = vmul.f32 1.442695, %v513_v13  ;;  %v726_v3 = vadd.f32 %v2554_v48, %v2521_v10  ;;  %v576_v35 = vmul.f32 1.442695, %v514_v23 }
 0x113   : > { %v2576_v41 = vpop.eup %1902  ;;  %1916 = vpow2.f32 %v564_v57  ;;  %v735_v52 = vadd.f32 %v2558_v31, %v2526_v51  ;;  %v578_v15 = vmul.f32 1.442695, %v515_v47  ;;  %v709_v16 = vadd.f32 %v2574_v37, %v708_v9 }
 0x114   : > { %v2580_v28 = vpop.eup %1904  ;;  %1918 = vpow2.f32 %v566_v53  ;;  %v744_v63 = vadd.f32 %v2562_v17, %v2530_v54  ;;  %v718_v39 = vadd.f32 %v2576_v41, %v717_v36  ;;  %v753_v19 = vadd.f32 %v2566_v12, %v2534_v55 }
 0x115   : > { %v2584_v6 = vpop.eup %1906  ;;  %1920 = vpow2.f32 %v568_v11  ;;  %v727_v44 = vadd.f32 %v2580_v28, %v726_v3  ;;  %v762_v8 = vadd.f32 %v2570_v30, %v2538_v5  ;;  %v771_v25 = vadd.f32 %v2572_v1, %v2542_v40 }
 0x116   : > { %v2588_v45 = vpop.eup %1908  ;;  %1922 = vpow2.f32 %v570_v59  ;;  %v736_v62 = vadd.f32 %v2584_v6, %v735_v52 }
 0x117   : > { %v2592_v21 = vpop.eup %1910  ;;  %1924 = vpow2.f32 %v572_v38  ;;  %v745_v57 = vadd.f32 %v2588_v45, %v744_v63 }
 0x118   : > { %v2597_v20 = vpop.eup %1912  ;;  %1926 = vpow2.f32 %v574_v24  ;;  %v754_v23 = vadd.f32 %v2592_v21, %v753_v19 }
 0x119   : > { %v2602_v34 = vpop.eup %1914  ;;  %1928 = vpow2.f32 %v576_v35  ;;  %v763_v9 = vadd.f32 %v2597_v20, %v762_v8 }
 0x11a   : > { %v2607_v27 = vpop.eup %1916  ;;  %1930 = vpow2.f32 %v578_v15  ;;  %v772_v3 = vadd.f32 %v2602_v34, %v771_v25 }
 0x11b   : > { %v2612_v2 = vpop.eup %1918  ;;  %v710_v43 = vadd.f32 %v2607_v27, %v709_v16 }
 0x11c   : > { %v2616_v13 = vpop.eup %1920  ;;  %v719_v53 = vadd.f32 %v2612_v2, %v718_v39 }
 0x11d   : > { %v2620_v11 = vpop.eup %1922  ;;  %v711_v47 = vrot.slane %v710_v43, 4  ;;  %v728_v59 = vadd.f32 %v2616_v13, %v727_v44 }
 0x11e   : > { %v2624_v38 = vpop.eup %1924  ;;  %v720_v36 = vrot.slane %v719_v53, 4  ;;  %v737_v24 = vadd.f32 %v2620_v11, %v736_v62 }
 0x11f   : > { %v2628_v35 = vpop.eup %1926  ;;  %v712_v52 = vadd.f32 %v711_v47, %v710_v43  ;;  %v729_v15 = vrot.slane %v728_v59, 4  ;;  %v746_v16 = vadd.f32 %v2624_v38, %v745_v57 }
 0x120   : > { %v2631_v63 = vpop.eup %1928  ;;  %v721_v39 = vadd.f32 %v720_v36, %v719_v53  ;;  %v738_v19 = vrot.slane %v737_v24, 4  ;;  %v755_v44 = vadd.f32 %v2628_v35, %v754_v23 }
 0x121   : > { %v2634_v8 = vpop.eup %1930  ;;  %v713_v22 = vrot.slane %v712_v52, 2  ;;  %v730_v42 = vadd.f32 %v729_v15, %v728_v59  ;;  %v747_v1 = vrot.slane %v746_v16, 4  ;;  %v764_v62 = vadd.f32 %v2631_v63, %v763_v9 }
 0x122   : > { %v722_v25 = vrot.slane %v721_v39, 2  ;;  %v739_v30 = vadd.f32 %v738_v19, %v737_v24  ;;  %v756_v12 = vrot.slane %v755_v44, 4  ;;  %v773_v43 = vadd.f32 %v2634_v8, %v772_v3 }
 0x123   : > { %v714_v47 = vadd.f32 %v713_v22, %v712_v52  ;;  %v731_v57 = vrot.slane %v730_v42, 2  ;;  %v748_v17 = vadd.f32 %v747_v1, %v746_v16  ;;  %v765_v31 = vrot.slane %v764_v62, 4 }
 0x124   : > { %v723_v53 = vadd.f32 %v722_v25, %v721_v39  ;;  %v740_v36 = vrot.slane %v739_v30, 2  ;;  %v757_v48 = vadd.f32 %v756_v12, %v755_v44  ;;  %v774_v23 = vrot.slane %v773_v43, 4 }
 0x125   : > { %v715_v26 = vrot.slane %v714_v47, 1  ;;  %v732_v40 = vadd.f32 %v731_v57, %v730_v42  ;;  %v749_v61 = vrot.slane %v748_v17, 2  ;;  %v766_v59 = vadd.f32 %v765_v31, %v764_v62 }
 0x126   : > { %v724_v15 = vrot.slane %v723_v53, 1  ;;  %v741_v46 = vadd.f32 %v740_v36, %v739_v30  ;;  %v758_v9 = vrot.slane %v757_v48, 2  ;;  %v775_v4 = vadd.f32 %v774_v23, %v773_v43 }
 0x127   : > { %v2638_v24 = vadd.f32 %v715_v26, %v714_v47  ;;  %v733_v19 = vrot.slane %v732_v40, 1  ;;  %v750_v3 = vadd.f32 %v749_v61, %v748_v17  ;;  %v767_v22 = vrot.slane %v766_v59, 2 }
 0x128   : > { %v2640_v52 = vadd.f32 %v724_v15, %v723_v53  ;;  %v742_v1 = vrot.slane %v741_v46, 1  ;;  %v759_v16 = vadd.f32 %v758_v9, %v757_v48  ;;  %v776_v39 = vrot.slane %v775_v4, 2 }
 0x129   : > { %v768_v12 = vadd.f32 %v767_v22, %v766_v59  ;;  %1932 = vrcp.f32 %v2638_v24  ;;  %v2643_v42 = vadd.f32 %v733_v19, %v732_v40  ;;  %v751_v31 = vrot.slane %v750_v3, 1 }
 0x12a   : > { %v777_v44 = vadd.f32 %v776_v39, %v775_v4  ;;  %v2645_v30 = vadd.f32 %v742_v1, %v741_v46  ;;  %v760_v62 = vrot.slane %v759_v16, 1  ;;  %1934 = vrcp.f32 %v2640_v52 }
 0x12b   : > { %v769_v26 = vrot.slane %v768_v12, 1  ;;  %v791_v61 = vand.u32 2147483648, %v2638_v24  ;;  %v2649_v17 = vadd.f32 %v751_v31, %v750_v3  ;;  %1936 = vrcp.f32 %v2643_v42 }
 0x12c   : > { %v778_v25 = vrot.slane %v777_v44, 1  ;;  %v789_v40 = vand.u32 2147483647, %v2638_v24  ;;  %1938 = vrcp.f32 %v2645_v30  ;;  %v2656_v4 = vadd.f32 %v760_v62, %v759_v16 }
 0x12d   : > { %vm785_vm0 = vweird.f32 %v2638_v24  ;;  %v806_v43 = vand.u32 2147483648, %v2640_v52  ;;  %v2662_v47 = vadd.f32 %v769_v26, %v768_v12  ;;  %v792_v57 = vor.u32 1.1754944e-38, %v791_v61 }
 0x12e   : > { %vm800_vm1 = vweird.f32 %v2640_v52  ;;  %v804_v53 = vand.u32 2147483647, %v2640_v52  ;;  %v2668_v23 = vadd.f32 %v778_v25, %v777_v44  ;;  %v821_v15 = vand.u32 2147483648, %v2643_v42 }
 0x12f   : > { %v2652_v48 = vpop.eup %1932  ;;  %1940 = vrcp.f32 %v2649_v17  ;;  %vm2673_vm3 = vcmp.eq.f32.partialorder %v789_v40, 8.507059e+37  ;;  %vm815_vm4 = vweird.f32 %v2643_v42  ;;  %v819_v3 = vand.u32 2147483647, %v2643_v42 }
 0x130   : > { %v781_v46 = vmul.f32 %v2652_v48, %v2638_v24  ;;  %v2666_v36 = vpop.eup %1934  ;;  %vm786_vm2 = vweird.f32 %v2652_v48  ;;  %v807_v16 = vor.u32 1.1754944e-38, %v806_v43  ;;  %v836_v39 = vand.u32 2147483648, %v2645_v30 }
 0x131   : > { %v796_v19 = vmul.f32 %v2666_v36, %v2640_v52  ;;  %v2681_v22 = vpop.eup %1936  ;;  %1942 = vrcp.f32 %v2656_v4  ;;  %vm2688_vm5 = vcmp.eq.f32.partialorder %v804_v53, 8.507059e+37  ;;  %vm830_vm6 = vweird.f32 %v2645_v30  ;;  %vm2714_vm10 = vmor %vm785_vm0, %vm786_vm2 }
 0x132   : > { %v782_v59 = vsub.f32 1.0, %v781_v46  ;;  %v2686_v12 = vpop.eup %1938  ;;  %v811_v62 = vmul.f32 %v2681_v22, %v2643_v42  ;;  %v834_v26 = vand.u32 2147483647, %v2645_v30  ;;  %v822_v25 = vor.u32 1.1754944e-38, %v821_v15 }
 0x133   : > { %v797_v31 = vsub.f32 1.0, %v796_v19  ;;  %v826_v40 = vmul.f32 %v2686_v12, %v2645_v30  ;;  %v851_v46 = vand.u32 2147483648, %v2649_v17  ;;  %vm801_vm7 = vweird.f32 %v2666_v36 }
 0x134   : > { %v783_v1 = vmul.f32 %v2652_v48, %v782_v59  ;;  %v812_v53 = vsub.f32 1.0, %v811_v62  ;;  %vm2702_vm8 = vcmp.eq.f32.partialorder %v819_v3, 8.507059e+37  ;;  %vm845_vm9 = vweird.f32 %v2649_v17  ;;  %vm2736_vm14 = vmor %vm800_vm1, %vm801_vm7 }
 0x135   : > { %v798_v43 = vmul.f32 %v2666_v36, %v797_v31  ;;  %v849_v19 = vand.u32 2147483647, %v2649_v17  ;;  %vm816_vm11 = vweird.f32 %v2681_v22  ;;  %v827_v3 = vsub.f32 1.0, %v826_v40 }
 0x136   : > { %v784_v61 = vadd.f32 %v2652_v48, %v783_v1  ;;  %v2708_v1 = vpop.eup %1940  ;;  %v837_v31 = vor.u32 1.1754944e-38, %v836_v39  ;;  %1944 = vrcp.f32 %v2662_v47  ;;  %v813_v60 = vmul.f32 %v2681_v22, %v812_v53  ;;  %vm2760_vm1 = vmor %vm815_vm4, %vm816_vm11 }
 0x137   : > { %v799_v5 = vadd.f32 %v2666_v36, %v798_v43  ;;  %vm2725_vm12 = vcmp.eq.f32.partialorder %v834_v26, 8.507059e+37  ;;  %v841_v33 = vmul.f32 %v2708_v1, %v2649_v17  ;;  %vm860_vm13 = vweird.f32 %v2656_v4  ;;  %v1943_v39 = vpop.eup %1942 }
 0x138   : > { %v788_v62 = vsel %vm2714_vm10, %v2652_v48, %v784_v61  ;;  %v828_v61 = vmul.f32 %v2686_v12, %v827_v3  ;;  %vm831_vm15 = vweird.f32 %v2686_v12  ;;  %v852_v26 = vor.u32 1.1754944e-38, %v851_v46 }
 0x139   : > { %v864_v40 = vand.u32 2147483647, %v2656_v4  ;;  %v803_v43 = vsel %vm2736_vm14, %v2666_v36, %v799_v5  ;;  %v814_v53 = vadd.f32 %v2681_v22, %v813_v60  ;;  %v842_v15 = vsub.f32 1.0, %v841_v33  ;;  %vm2781_vm4 = vmor %vm830_vm6, %vm831_vm15 }
 0x13a   : > { %vm2747_vm0 = vcmp.eq.f32.partialorder %v849_v19, 8.507059e+37  ;;  %v856_v55 = vmul.f32 %v1943_v39, %v2656_v4  ;;  %v2754_v3 = vsel %vm2673_vm3, %v792_v57, %v788_v62  ;;  %v829_v33 = vadd.f32 %v2686_v12, %v828_v61 }
 0x13b   : > { %v866_v60 = vand.u32 2147483648, %v2656_v4  ;;  %v879_v5 = vand.u32 2147483647, %v2662_v47  ;;  %v818_v36 = vsel %vm2760_vm1, %v2681_v22, %v814_v53  ;;  %v843_v57 = vmul.f32 %v2708_v1, %v842_v15 }
 0x13c   : > { %vm846_vm2 = vweird.f32 %v2708_v1  ;;  %v857_v9 = vsub.f32 1.0, %v856_v55  ;;  %vm875_vm3 = vweird.f32 %v2662_v47  ;;  %v1945_v42 = vpop.eup %1944  ;;  %v2775_v19 = vsel %vm2688_vm5, %v807_v16, %v803_v43 }
 0x13d   : > { %vm861_vm7 = vweird.f32 %v1943_v39  ;;  %v881_v22 = vand.u32 2147483648, %v2662_v47  ;;  %1946 = vrcp.f32 %v2668_v23  ;;  %v833_v55 = vsel %vm2781_vm4, %v2686_v12, %v829_v33  ;;  %vm2798_vm5 = vmor %vm845_vm9, %vm846_vm2 }
 0x13e   : > { %v844_v16 = vadd.f32 %v2708_v1, %v843_v57  ;;  %v858_v44 = vmul.f32 %v1943_v39, %v857_v9  ;;  %v871_v48 = vmul.f32 %v1945_v42, %v2662_v47  ;;  %v2794_v30 = vsel %vm2702_vm8, %v822_v25, %v818_v36  ;;  %vm862_vm8 = vmor %vm860_vm13, %vm861_vm7 }
 0x13f   : > { %vm2802_vm6 = vcmp.eq.f32.partialorder %v864_v40, 8.507059e+37  ;;  %v867_v12 = vor.u32 1.1754944e-38, %v866_v60  ;;  %vm2806_vm10 = vcmp.eq.f32.partialorder %v879_v5, 8.507059e+37  ;;  %v896_v17 = vand.u32 2147483648, %v2668_v23 }
 0x140   : > { %v848_v25 = vsel %vm2798_vm5, %v2708_v1, %v844_v16  ;;  %v859_v59 = vadd.f32 %v1943_v39, %v858_v44  ;;  %v872_v15 = vsub.f32 1.0, %v871_v48  ;;  %v2816_v46 = vsel %vm2725_vm12, %v837_v31, %v833_v55 }
 0x141   : > { %vm876_vm9 = vweird.f32 %v1945_v42  ;;  %v2823_v40 = vmul.f32 %v2607_v27, %v2754_v3  ;;  %v2827_v1 = vmul.f32 %v2612_v2, %v2775_v19  ;;  %v882_v5 = vor.u32 1.1754944e-38, %v881_v22 }
 0x142   : > { %v863_v33 = vsel %vm862_vm8, %v1943_v39, %v859_v59  ;;  %v873_v60 = vmul.f32 %v1945_v42, %v872_v15  ;;  %vm890_vm11 = vweird.f32 %v2668_v23  ;;  %v2832_v24 = vsel %vm2747_vm0, %v852_v26, %v848_v25  ;;  %vm877_vm12 = vmor %vm875_vm3, %vm876_vm9 }
 0x143   : > { %v1947_v31 = vpop.eup %1946  ;;  %v894_v4 = vand.u32 2147483647, %v2668_v23  ;;  %v2837_v27 = vmul.f32 %v2616_v13, %v2794_v30  ;;  %v1432_v2 = vadd.f32 %v2827_v1, %v2823_v40  ;;  %v2843_v39 = vsel %vm2802_vm6, %v867_v12, %v863_v33 }
 0x144   : > { %v874_v36 = vadd.f32 %v1945_v42, %v873_v60  ;;  %v886_v57 = vmul.f32 %v1947_v31, %v2668_v23  ;;  %v897_v9 = vor.u32 1.1754944e-38, %v896_v17  ;;  %v2851_v26 = vmul.f32 %v2620_v11, %v2816_v46 }
 0x145   : > { %v1433_v13 = vadd.f32 %v1432_v2, %v2837_v27  ;;  %v2856_v52 = vmul.f32 %v2574_v37, %v2754_v3  ;;  %v2860_v62 = vmul.f32 %v2576_v41, %v2775_v19  ;;  %vm891_vm13 = vweird.f32 %v1947_v31 }
 0x146   : > { %v878_v22 = vsel %vm877_vm12, %v1945_v42, %v874_v36  ;;  %v887_v55 = vsub.f32 1.0, %v886_v57  ;;  %v2864_v47 = vmul.f32 %v2624_v38, %v2832_v24  ;;  %v2868_v11 = vmul.f32 %v2628_v35, %v2843_v39  ;;  %vm892_vm14 = vmor %vm890_vm11, %vm891_vm13  ;;  %v3245_v36 = vld [vmem:[#allocation9_spill] sm:$0xff] }
 0x147   : > { %v1434_v16 = vadd.f32 %v1433_v13, %v2851_v26  ;;  %v2873_v37 = vmul.f32 %v2580_v28, %v2794_v30  ;;  %v1423_v41 = vadd.f32 %v2860_v62, %v2856_v52  ;;  %v2879_v42 = vsel %vm2806_vm10, %v882_v5, %v878_v22 }
 0x148   : > { %v888_v44 = vmul.f32 %v1947_v31, %v887_v55  ;;  %v2883_v38 = vmul.f32 %v2584_v6, %v2816_v46  ;;  %v900_v35 = vmul.f32 %v2511_v50, %v2754_v3  ;;  %v2890_v28 = vmul.f32 %v2588_v45, %v2832_v24  ;;  %v3248_v55 = vld [vmem:[#allocation25_spill] sm:$0xff] }
 0x149   : > { %v1435_v48 = vadd.f32 %v1434_v16, %v2864_v47  ;;  %v1424_v61 = vadd.f32 %v1423_v41, %v2873_v37  ;;  %v901_v43 = vmul.f32 %v2517_v56, %v2775_v19  ;;  %v2897_v53 = vmul.f32 %v2592_v21, %v2843_v39 }
 0x14a   : > { %v889_v12 = vadd.f32 %v1947_v31, %v888_v44  ;;  %v902_v6 = vmul.f32 %v2521_v10, %v2794_v30  ;;  %v903_v50 = vmul.f32 %v2526_v51, %v2816_v46  ;;  %1176 = vmatmul.f32.vlgmr.msra.gmra.mxu0 %v900_v35  ;;  %v2908_v45 = vmul.f32 %v2631_v63, %v2879_v42 }
 0x14b   : > { %v1436_v56 = vadd.f32 %v1435_v48, %v2868_v11  ;;  %v1425_v21 = vadd.f32 %v1424_v61, %v2883_v38  ;;  %v1405_v25 = vadd.f32 %v901_v43, %v900_v35  ;;  %1205 = vmatmul.f32.vlgmr.msra.gmra.mxu1 %v901_v43  ;;  %vm895_vm15 = vcmp.eq.f32.partialorder %v894_v4, 8.507059e+37  ;;  %v3244_v4 = vld [vmem:[#allocation22_spill] sm:$0xff]  ;;  %v3249_v35 = vld [vmem:[#allocation16_spill] sm:$0xff] }
 0x14c   : > { %v893_v59 = vsel %vm892_vm14, %v1947_v31, %v889_v12  ;;  %1234 = vmatmul.f32.vlgmr.msra.gmra.mxu2 %v902_v6  ;;  %1263 = vmatmul.f32.vlgmr.msra.gmra.mxu3 %v903_v50  ;;  %v2914_v10 = vmul.f32 %v2252_v14, %v2384_v32  ;;  %v2918_v51 = vmul.f32 %v2271_v18, %v2411_v58  ;;  %v3250_v61 = vld [vmem:[#allocation26_spill] sm:$0xff]  ;;  %v3251_v12 = vld [vmem:[#allocation24_spill] sm:$0xff]  ;;  %vm315_vm0 = vcmask 7168  }
 0x14d   : > { %v2920_v63 = vsel %vm895_vm15, %v897_v9, %v893_v59  ;;  %v1437_v23 = vadd.f32 %v1436_v56, %v2908_v45  ;;  %v1426_v15 = vadd.f32 %v1425_v21, %v2890_v28  ;;  %v1406_v17 = vadd.f32 %v1405_v25, %v902_v6  ;;  %v3253_v21 = vld [vmem:[#allocation27_spill] sm:$0xff]  ;;  %v3254_v59 = vld [vmem:[#allocation28_spill] sm:$0xff] }
 0x14e   : > { %v2926_v33 = vmul.f32 %v2634_v8, %v2920_v63  ;;  %v2930_v60 = vmul.f32 %v2597_v20, %v2879_v42  ;;  %v2934_v14 = vmul.f32 %v2530_v54, %v2832_v24  ;;  %1289 = vmatpush.xpose.msrb.mxu0 %v2914_v10  ;;  %1318 = vmatpush.xpose.msrb.mxu1 %v2918_v51  ;;  %vm310_vm1 = vcmask 261120  }
 0x14f   : > { %v1427_v18 = vadd.f32 %v1426_v15, %v2897_v53  ;;  %v1407_v5 = vadd.f32 %v1406_v17, %v903_v50  ;;  %v2941_v31 = vmul.f32 %v2396_v49, %v2487_v7  ;;  %v2945_v8 = vmul.f32 %v2423_v0, %v2509_v29  ;;  %v3246_v0 = vld [vmem:[#allocation11_spill] sm:$0xff]  ;;  %v3252_v50 = vld [vmem:[#allocation18_spill] sm:$0xff]  ;;  %v3255_v15 = vld [vmem:[#allocation8_spill] sm:$0xff] }
 0x150   : > { %v1438_v20 = vadd.f32 %v1437_v23, %v2926_v33  ;;  %v2950_v54 = vmul.f32 %v2602_v34, %v2920_v63  ;;  %v2954_v2 = vmul.f32 %v3244_v4, %v2843_v39  ;;  %v1136_v57 = vmul.f32 %v3245_v36, %v2384_v32  ;;  %v3247_v34 = vld [vmem:[#allocation23_spill] sm:$0xff]  ;;  %v3257_v4 = vld [vmem:[#allocation12_spill] sm:$0xff] }
 0x151   : > { %v1428_v49 = vadd.f32 %v1427_v18, %v2930_v60  ;;  %v1408_v9 = vadd.f32 %v1407_v5, %v2934_v14  ;;  %1347 = vmatpush.xpose.msrb.mxu2 %v2941_v31  ;;  %1376 = vmatpush.xpose.msrb.mxu3 %v2945_v8  ;;  %v1137_v13 = vmul.f32 %v3246_v0, %v2411_v58  ;;  %v3256_v18 = vld [vmem:[#allocation10_spill] sm:$0xff] }
 0x152   : > { %1439 = vadd.xlane.f32.xlu1 %v1438_v20  ;;  %v2966_v22 = vmul.f32 %v3247_v34, %v2879_v42  ;;  %1290 = vmatpush.xpose.msrb.mxu0 %v1136_v57  ;;  %v908_v16 = vmul.f32 %v3248_v55, %v2754_v3  ;;  %v1138_v48 = vmul.f32 %v3249_v35, %v2487_v7 }
 0x153   : > { %v1429_v41 = vadd.f32 %v1428_v49, %v2950_v54  ;;  %v1409_v44 = vadd.f32 %v1408_v9, %v2954_v2  ;;  %1319 = vmatpush.xpose.msrb.mxu1 %v1137_v13  ;;  %v909_v43 = vmul.f32 %v3250_v61, %v2775_v19  ;;  %v907_v6 = vmul.f32 %v3251_v12, %v2920_v63  ;;  %v3259_v9 = vld [vmem:[#allocation29_spill] sm:$0xff] }
 0x154   : > { %v2980_v56 = vmul.f32 %v3252_v50, %v2509_v29  ;;  %1179 = vmatmul.f32.gmra.mxu0 %v908_v16  ;;  %v910_v25 = vmul.f32 %v3253_v21, %v2794_v30  ;;  %v911_v23 = vmul.f32 %v3254_v59, %v2816_v46  ;;  %v1128_v17 = vmul.f32 %v3255_v15, %v2384_v32  ;;  %v3258_v46 = vld [vmem:[#allocation17_spill] sm:$0xff] }
 0x155   : > { %1430 = vadd.xlane.f32.xlu0 %v1429_v41  ;;  %v1410_v3 = vadd.f32 %v1409_v44, %v2966_v22  ;;  %1348 = vmatpush.xpose.msrb.mxu2 %v1138_v48  ;;  %v1414_v19 = vadd.f32 %v909_v43, %v908_v16  ;;  %v1129_v5 = vmul.f32 %v3256_v18, %v2411_v58  ;;  %v3260_v58 = vld [vmem:[#allocation30_spill] sm:$0xff]  ;;  %v3262_v44 = vld [vmem:[#allocation15_spill] sm:$0xff] }
 0x156   : > { %1377 = vmatpush.xpose.msrb.mxu3 %v2980_v56  ;;  %1208 = vmatmul.f32.gmra.mxu1 %v909_v43  ;;  %v1130_v36 = vmul.f32 %v3257_v4, %v2487_v7  ;;  %v1131_v49 = vmul.f32 %v3258_v46, %v2509_v29  ;;  %v912_v32 = vmul.f32 %v3259_v9, %v2832_v24  ;;  %v3261_v7 = vld [vmem:[#allocation31_spill] sm:$0xff]  ;;  %v3263_v29 = vld [vmem:[#allocation32_spill] sm:$0xff] }
 0x157   : > { %v1411_v20 = vadd.f32 %v1410_v3, %v907_v6  ;;  %1237 = vmatmul.f32.gmra.mxu2 %v910_v25  ;;  %1266 = vmatmul.f32.gmra.mxu3 %v911_v23  ;;  %v1415_v30 = vadd.f32 %v1414_v19, %v910_v25  ;;  %v913_v34 = vmul.f32 %v3260_v58, %v2843_v39 }
 0x158   : > { %1291 = vmatpush.xpose.msrb.mxu0 %v1128_v17  ;;  %1320 = vmatpush.xpose.msrb.mxu1 %v1129_v5  ;;  %v914_v16 = vmul.f32 %v3261_v7, %v2879_v42  ;;  %v1457_v35 = vadd.f32 %v3262_v44, %v1128_v17  ;;  %v915_v24 = vmul.f32 %v3263_v29, %v2920_v63 }
 0x159   : > { %1412 = vadd.xlane.f32.xlu2 %v1411_v20  ;;  %1349 = vmatpush.xpose.msrb.mxu2 %v1130_v36  ;;  %v1416_v0 = vadd.f32 %v1415_v30, %v911_v23 }
 0x15a   : > { %1378 = vmatpush.xpose.msrb.mxu3 %v1131_v49  ;;  %v1458_v43 = vadd.f32 %v1457_v35, %v1129_v5 }
 0x15b   : > { %v1417_v55 = vadd.f32 %v1416_v0, %v912_v32 }
 0x15c   : > { %1182 = vmatmul.f32.gmra.mxu0 %v2856_v52  ;;  %v3264_v52 = vld [vmem:[#allocation14_spill] sm:$0xff]  ;;  %v1459_v12 = vadd.f32 %v1458_v43, %v1130_v36 }
 0x15d   : > { %v1418_v41 = vadd.f32 %v1417_v55, %v913_v34  ;;  %v1466_v42 = vadd.f32 %v3264_v52, %v1136_v57  ;;  %v3267_v57 = vld [vmem:[#allocation19_spill] sm:$0xff] }
 0x15e   : > { %1211 = vmatmul.f32.gmra.mxu1 %v2860_v62  ;;  %v2029_v62 = vmov 0.0  }
 0x15f   : > { %1240 = vmatmul.f32.gmra.mxu2 %v2873_v37  ;;  %1269 = vmatmul.f32.gmra.mxu3 %v2883_v38  ;;  %v1419_v61 = vadd.f32 %v1418_v41, %v914_v16  ;;  %319 = vst.msk [vmem:[#allocation3 + $0x18] sm:$0xff] %vm315_vm0, %v2029_v62  ;;  %v1467_v37 = vadd.f32 %v1466_v42, %v1137_v13 }
 0x160   : > { %316 = vst.msk [vmem:[#allocation3] sm:$0xff] %vm315_vm0, %v2029_v62  ;;  %v1460_v38 = vadd.f32 %v1459_v12, %v1131_v49 }
 0x161   : > { %v1420_v39 = vadd.f32 %v1419_v61, %v915_v24  ;;  %317 = vst.msk [vmem:[#allocation3 + $0x8] sm:$0xff] %vm315_vm0, %v2029_v62 }
 0x162   : > { %318 = vst.msk [vmem:[#allocation3 + $0x10] sm:$0xff] %vm315_vm0, %v2029_v62 }
 0x163   : > { %1421 = vadd.xlane.f32.xlu2 %v1420_v39  ;;  %320 = vst.msk [vmem:[#allocation4] sm:$0xff] %vm315_vm0, %v2029_v62 }
 0x164   : > { %1185 = vmatmul.f32.gmra.mxu0 %v2823_v40  ;;  %321 = vst.msk [vmem:[#allocation4 + $0x8] sm:$0xff] %vm315_vm0, %v2029_v62  ;;  %v3265_v40 = vld [vmem:[#allocation13_spill] sm:$0xff] }
 0x165   : > { %322 = vst.msk [vmem:[#allocation4 + $0x10] sm:$0xff] %vm315_vm0, %v2029_v62 }
 0x166   : > { %1214 = vmatmul.f32.gmra.mxu1 %v2827_v1  ;;  %v1475_v1 = vadd.f32 %v3265_v40, %v2914_v10  ;;  %323 = vst.msk [vmem:[#allocation4 + $0x18] sm:$0xff] %vm315_vm0, %v2029_v62 }
 0x167   : > { %1243 = vmatmul.f32.gmra.mxu2 %v2837_v27  ;;  %1272 = vmatmul.f32.gmra.mxu3 %v2851_v26  ;;  %v1468_v27 = vadd.f32 %v1467_v37, %v1138_v48  ;;  %v1401_v50 = vld [vmem:[#allocation3] sm:$0xff]  ;;  %311 = vst.msk [vmem:[#allocation2] sm:$0xff] %vm310_vm1, %v2029_v62 }
 0x168   : > { %v1476_v26 = vadd.f32 %v1475_v1, %v2918_v51  ;;  %v3268_v51 = vld [vmem:[#allocation21_spill] sm:$0xff]  ;;  %312 = vst.msk [vmem:[#allocation2 + $0x8] sm:$0xff] %vm310_vm1, %v2029_v62 }
 0x169   : > { %v1469_v63 = vadd.f32 %v1468_v27, %v2980_v56  ;;  %v1402_v19 = vld [vmem:[#allocation3 + $0x8] sm:$0xff]  ;;  %313 = vst.msk [vmem:[#allocation2 + $0x10] sm:$0xff] %vm310_vm1, %v2029_v62 }
 0x16a   : > { %v1477_v10 = vadd.f32 %v1476_v26, %v2941_v31  ;;  %v1450_v46 = vld [vmem:[#allocation4] sm:$0xff]  ;;  %314 = vst.msk [vmem:[#allocation2 + $0x18] sm:$0xff] %vm310_vm1, %v2029_v62 }
 0x16b   : > { %1461 = vadd.xlane.f32.xlu2 %v1460_v38  ;;  %v1451_v41 = vld [vmem:[#allocation4 + $0x8] sm:$0xff] }
 0x16c   : > { %1292 = vmatmul.f32.vlgmr.msrb.gmra.mxu0 %v2934_v14  ;;  %v1478_v14 = vadd.f32 %v1477_v10, %v2945_v8  ;;  %v1403_v8 = vld [vmem:[#allocation3 + $0x10] sm:$0xff] }
 0x16d   : > { %v1452_v37 = vld [vmem:[#allocation4 + $0x10] sm:$0xff] }
 0x16e   : > { %1321 = vmatmul.f32.vlgmr.msrb.gmra.mxu1 %v2954_v2  ;;  %v3266_v2 = vld [vmem:[#allocation20_spill] sm:$0xff] }
 0x16f   : > { %1350 = vmatmul.f32.vlgmr.msrb.gmra.mxu2 %v2966_v22  ;;  %1379 = vmatmul.f32.vlgmr.msrb.gmra.mxu3 %v907_v6  ;;  %v1486_v13 = vadd.f32 %v3267_v57, %v3266_v2 }
 0x171   : > { %v1487_v22 = vadd.f32 %v1486_v13, %v3268_v51 }
 0x173   : > { %1470 = vadd.xlane.f32.xlu2 %v1469_v63 }
 0x174   : > { %1295 = vmatmul.f32.gmra.mxu0 %v912_v32 }
 0x176   : > { %1324 = vmatmul.f32.gmra.mxu1 %v913_v34 }
 0x177   : > { %1353 = vmatmul.f32.gmra.mxu2 %v914_v16  ;;  %1382 = vmatmul.f32.gmra.mxu3 %v915_v24 }
 0x17b   : > { %1479 = vadd.xlane.f32.xlu2 %v1478_v14 }
 0x17c   : > { %1298 = vmatmul.f32.gmra.mxu0 %v2890_v28  ;;  %v1404_v28 = vld [vmem:[#allocation3 + $0x18] sm:$0xff] }
 0x17e   : > { %1327 = vmatmul.f32.gmra.mxu1 %v2897_v53 }
 0x17f   : > { %1356 = vmatmul.f32.gmra.mxu2 %v2930_v60  ;;  %1385 = vmatmul.f32.gmra.mxu3 %v2950_v54 }
 0x183   : > { %1488 = vadd.xlane.f32.xlu2 %v1487_v22  ;;  %v1156_v22 = vld [vmem:[#allocation2] sm:$0xff] }
 0x184   : > { %1301 = vmatmul.f32.gmra.mxu0 %v2864_v47 }
 0x186   : > { %1330 = vmatmul.f32.gmra.mxu1 %v2868_v11 }
 0x187   : > { %1359 = vmatmul.f32.gmra.mxu2 %v2908_v45  ;;  %1388 = vmatmul.f32.gmra.mxu3 %v2926_v33 }
 0x1c5   : > { %v1440_v31 = vpop.xlane.xlu1 %1439 }
 0x1c6   : > { %v1444_v53 = vadd.f32 %v1440_v31, %v1404_v28 }
 0x1c7   : > { %v1177_v60 = vpop.f32.mrf.mxu0 }
 0x1c8   : > { %1449 = vst.msk [vmem:[#allocation3 + $0x18] sm:$0xff] %vm315_vm0, %v1444_v53  ;;  %v1431_v54 = vpop.xlane.xlu0 %1430  ;;  %v1206_v6 = vpop.f32.mrf.mxu1  ;;  %v1453_v53 = vld [vmem:[#allocation4 + $0x18] sm:$0xff] }
 0x1c9   : > { %v1443_v48 = vadd.f32 %v1431_v54, %v1403_v8  ;;  %v1207_v16 = vadd.f32 %v1206_v6, %v1177_v60 }
 0x1cb   : > { %1448 = vst.msk [vmem:[#allocation3 + $0x10] sm:$0xff] %vm315_vm0, %v1443_v48 }
 0x1cc   : > { %v1413_v47 = vpop.xlane.xlu2 %1412 }
 0x1cd   : > { %v1441_v11 = vadd.f32 %v1413_v47, %v1401_v50 }
 0x1cf   : > { %v1516_v45 = vld [vmem:[#allocation3 + $0x18] sm:$0xff]  ;;  %1446 = vst.msk [vmem:[#allocation3] sm:$0xff] %vm315_vm0, %v1441_v11  ;;  %v1235_v56 = vpop.f32.mrf.mxu2  ;;  %v1264_v3 = vpop.f32.mrf.mxu3 }
 0x1d0   : > { %v1520_v33 = vmul.f32 0.0009765625, %v1516_v45  ;;  %v1236_v44 = vadd.f32 %v1235_v56, %v1207_v16 }
 0x1d1   : > { %v1180_v21 = vpop.f32.mrf.mxu0 }
 0x1d2   : > { %1524 = vst.msk [vmem:[%s3058_s11 + $0x18] sm:$0xff] %vm315_vm0, %v1520_v33  ;;  %v1515_v25 = vld [vmem:[#allocation3 + $0x10] sm:$0xff]  ;;  %v1265_v42 = vadd.f32 %v1264_v3, %v1236_v44 }
 0x1d3   : > { %v1519_v59 = vmul.f32 0.0009765625, %v1515_v25  ;;  %v1209_v23 = vpop.f32.mrf.mxu1 }
 0x1d4   : > { %v1210_v62 = vadd.f32 %v1209_v23, %v1180_v21 }
 0x1d5   : > { %1523 = vst.msk [vmem:[%s3058_s11 + $0x10] sm:$0xff] %vm315_vm0, %v1519_v59  ;;  %v1157_v59 = vld [vmem:[#allocation2 + $0x8] sm:$0xff] }
 0x1d6   : > { %v1513_v15 = vld [vmem:[#allocation3] sm:$0xff]  ;;  %v1422_v18 = vpop.xlane.xlu2 %1421 }
 0x1d7   : > { %v1517_v17 = vmul.f32 0.0009765625, %v1513_v15  ;;  %v1442_v5 = vadd.f32 %v1422_v18, %v1402_v19 }
 0x1d9   : > { %1521 = vst.msk [vmem:[%s3058_s11] sm:$0xff] %vm315_vm0, %v1517_v17  ;;  %v1183_v20 = vpop.f32.mrf.mxu0 }
 0x1da   : > { %1447 = vst.msk [vmem:[#allocation3 + $0x8] sm:$0xff] %vm315_vm0, %v1442_v5  ;;  %v1238_v4 = vpop.f32.mrf.mxu2  ;;  %v1267_v36 = vpop.f32.mrf.mxu3 }
 0x1db   : > { %v1212_v30 = vpop.f32.mrf.mxu1  ;;  %v1239_v40 = vadd.f32 %v1238_v4, %v1210_v62 }
 0x1dc   : > { %v1213_v31 = vadd.f32 %v1212_v30, %v1183_v20 }
 0x1dd   : > { %v1268_v13 = vadd.f32 %v1267_v36, %v1239_v40 }
 0x1de   : > { %v1462_v49 = vpop.xlane.xlu2 %1461 }
 0x1df   : > { %v1490_v9 = vadd.f32 %v1462_v49, %v1450_v46 }
 0x1e1   : > { %v1514_v32 = vld [vmem:[#allocation3 + $0x8] sm:$0xff]  ;;  %v3068_v0 = vpop.f32.mrf.mxu0  ;;  %1494 = vst.msk [vmem:[#allocation4] sm:$0xff] %vm315_vm0, %v1490_v9 }
 0x1e2   : > { %v1518_v58 = vmul.f32 0.0009765625, %v1514_v32  ;;  %v1241_v34 = vpop.f32.mrf.mxu2  ;;  %v1270_v55 = vpop.f32.mrf.mxu3 }
 0x1e3   : > { %v1215_v7 = vpop.f32.mrf.mxu1  ;;  %v1242_v54 = vadd.f32 %v1241_v34, %v1213_v31  ;;  %v1158_v34 = vld [vmem:[#allocation2 + $0x10] sm:$0xff] }
 0x1e4   : > { %1522 = vst.msk [vmem:[%s3058_s11 + $0x8] sm:$0xff] %vm315_vm0, %v1518_v58  ;;  %v1216_v23 = vadd.f32 %v1215_v7, %v3068_v0 }
 0x1e5   : > { %v1271_v21 = vadd.f32 %v1270_v55, %v1242_v54 }
 0x1e6   : > { %v1471_v35 = vpop.xlane.xlu2 %1470 }
 0x1e7   : > { %v1491_v29 = vadd.f32 %v1471_v35, %v1451_v41 }
 0x1e8   : > { %v1525_v24 = vld [vmem:[#allocation4] sm:$0xff] }
 0x1e9   : > { %v1293_v61 = vpop.f32.mrf.mxu0  ;;  %v1529_v39 = vmul.f32 0.0009765625, %v1525_v24  ;;  %1495 = vst.msk [vmem:[#allocation4 + $0x8] sm:$0xff] %vm315_vm0, %v1491_v29 }
 0x1ea   : > { %v1244_v43 = vpop.f32.mrf.mxu2  ;;  %v1273_v52 = vpop.f32.mrf.mxu3  ;;  %v1294_v38 = vadd.f32 %v1293_v61, %v1265_v42 }
 0x1eb   : > { %v1322_v12 = vpop.f32.mrf.mxu1  ;;  %1533 = vst.msk [vmem:[%s3086_s14] sm:$0xff] %vm315_vm0, %v1529_v39  ;;  %v1245_v18 = vadd.f32 %v1244_v43, %v1216_v23  ;;  %v1159_v39 = vld [vmem:[#allocation2 + $0x18] sm:$0xff] }
 0x1ec   : > { %v1323_v63 = vadd.f32 %v1322_v12, %v1294_v38 }
 0x1ed   : > { %v1274_v58 = vadd.f32 %v1273_v52, %v1245_v18 }
 0x1ee   : > { %v1480_v1 = vpop.xlane.xlu2 %1479 }
 0x1ef   : > { %v1492_v27 = vadd.f32 %v1480_v1, %v1452_v37 }
 0x1f0   : > { %v1526_v26 = vld [vmem:[#allocation4 + $0x8] sm:$0xff] }
 0x1f1   : > { %v1296_v10 = vpop.f32.mrf.mxu0  ;;  %v1530_v14 = vmul.f32 0.0009765625, %v1526_v26  ;;  %1496 = vst.msk [vmem:[#allocation4 + $0x10] sm:$0xff] %vm315_vm0, %v1492_v27 }
 0x1f2   : > { %v1351_v2 = vpop.f32.mrf.mxu2  ;;  %v1380_v57 = vpop.f32.mrf.mxu3  ;;  %v1297_v60 = vadd.f32 %v1296_v10, %v1268_v13 }
 0x1f3   : > { %v1352_v51 = vadd.f32 %v1351_v2, %v1323_v63  ;;  %1534 = vst.msk [vmem:[%s3086_s14 + $0x8] sm:$0xff] %vm315_vm0, %v1530_v14  ;;  %v1325_v28 = vpop.f32.mrf.mxu1 }
 0x1f4   : > { %v1326_v11 = vadd.f32 %v1325_v28, %v1297_v60 }
 0x1f5   : > { %v1381_v8 = vadd.f32 %v1380_v57, %v1352_v51 }
 0x1f6   : > { %v1489_v48 = vpop.xlane.xlu2 %1488 }
 0x1f7   : > { %v1392_v6 = vadd.f32 %v1381_v8, %v1156_v22  ;;  %v1493_v50 = vadd.f32 %v1489_v48, %v1453_v53 }
 0x1f8   : > { %v1527_v47 = vld [vmem:[#allocation4 + $0x10] sm:$0xff] }
 0x1f9   : > { %1397 = vst.msk [vmem:[#allocation2] sm:$0xff] %vm310_vm1, %v1392_v6  ;;  %v1299_v45 = vpop.f32.mrf.mxu0  ;;  %v1531_v33 = vmul.f32 0.0009765625, %v1527_v47 }
 0x1fa   : > { %1497 = vst.msk [vmem:[#allocation4 + $0x18] sm:$0xff] %vm315_vm0, %v1493_v50  ;;  %v1354_v56 = vpop.f32.mrf.mxu2  ;;  %v1383_v3 = vpop.f32.mrf.mxu3  ;;  %v1300_v15 = vadd.f32 %v1299_v45, %v1271_v21 }
 0x1fb   : > { %v1355_v25 = vadd.f32 %v1354_v56, %v1326_v11  ;;  %1535 = vst.msk [vmem:[%s3086_s14 + $0x10] sm:$0xff] %vm315_vm0, %v1531_v33  ;;  %v1328_v17 = vpop.f32.mrf.mxu1 }
 0x1fc   : > { %v1329_v36 = vadd.f32 %v1328_v17, %v1300_v15 }
 0x1fd   : > { %v1384_v19 = vadd.f32 %v1383_v3, %v1355_v25 }
 0x1ff   : > { %v1393_v5 = vadd.f32 %v1384_v19, %v1157_v59 }
 0x200   : > { %v1501_v20 = vld [vmem:[#allocation2] sm:$0xff] }
 0x201   : > { %v1528_v4 = vld [vmem:[#allocation4 + $0x18] sm:$0xff]  ;;  %1398 = vst.msk [vmem:[#allocation2 + $0x8] sm:$0xff] %vm310_vm1, %v1393_v5  ;;  %v1302_v30 = vpop.f32.mrf.mxu0  ;;  %v1505_v46 = vmul.f32 0.0009765625, %v1501_v20 }
 0x202   : > { %v1532_v49 = vmul.f32 0.0009765625, %v1528_v4  ;;  %v1357_v9 = vpop.f32.mrf.mxu2  ;;  %v1386_v32 = vpop.f32.mrf.mxu3  ;;  %v1303_v7 = vadd.f32 %v1302_v30, %v1274_v58 }
 0x203   : > { %v1358_v0 = vadd.f32 %v1357_v9, %v1329_v36  ;;  %1509 = vst.msk [vmem:[%s3103_s17] sm:$0xff] %vm310_vm1, %v1505_v46  ;;  %v1331_v41 = vpop.f32.mrf.mxu1 }
 0x204   : > { %1536 = vst.msk [vmem:[%s3086_s14 + $0x18] sm:$0xff] %vm315_vm0, %v1532_v49  ;;  %v1332_v35 = vadd.f32 %v1331_v41, %v1303_v7 }
 0x205   : > { %v1387_v55 = vadd.f32 %v1386_v32, %v1358_v0 }
 0x207   : > { %v1394_v16 = vadd.f32 %v1387_v55, %v1158_v34 }
 0x208   : > { %v1502_v44 = vld [vmem:[#allocation2 + $0x8] sm:$0xff] }
 0x209   : > { %1399 = vst.msk [vmem:[#allocation2 + $0x10] sm:$0xff] %vm310_vm1, %v1394_v16  ;;  %v1506_v29 = vmul.f32 0.0009765625, %v1502_v44 }
 0x20a   : > { %v1360_v24 = vpop.f32.mrf.mxu2  ;;  %v1389_v43 = vpop.f32.mrf.mxu3 }
 0x20b   : > { %v1361_v61 = vadd.f32 %v1360_v24, %v1332_v35  ;;  %1510 = vst.msk [vmem:[%s3103_s17 + $0x8] sm:$0xff] %vm310_vm1, %v1506_v29 }
 0x20d   : > { %v1390_v52 = vadd.f32 %v1389_v43, %v1361_v61 }
 0x20f   : > { %v1395_v42 = vadd.f32 %v1390_v52, %v1159_v39 }
 0x210   : > { %v1503_v12 = vld [vmem:[#allocation2 + $0x10] sm:$0xff] }
 0x211   : > { %1400 = vst.msk [vmem:[#allocation2 + $0x18] sm:$0xff] %vm310_vm1, %v1395_v42  ;;  %v1507_v62 = vmul.f32 0.0009765625, %v1503_v12 }
 0x213   : > { %1511 = vst.msk [vmem:[%s3103_s17 + $0x10] sm:$0xff] %vm310_vm1, %v1507_v62 }
 0x218   : > { %v1504_v37 = vld [vmem:[#allocation2 + $0x18] sm:$0xff] }
 0x219   : > { %v1508_v38 = vmul.f32 0.0009765625, %v1504_v37 }
 0x21b   : > { %1512 = vst.msk [vmem:[%s3103_s17 + $0x18] sm:$0xff] %vm310_vm1, %v1508_v38 }
 0x21c   : > { %1975 = shalt.err (!%p1972_p5)
}
 0x21d   : > { %s2030_s15 = smov 128   ;;  %s2031_s17 = smov 8  }
 0x21e   : > { %1727 = dma.vmem_to_hbm [thread:$0]  (%p2102_p4), %s1561_s7, 512, %s1563_s8, %s1538_s21, %s2030_s15, %s2030_s15, %s2031_s17  }
 0x21f PF: > { %p1733_p6 = scmp.ge.s32.totalorder %s2026_s23, 2  ;;  %s1583_s24 = sand.u32 1, %s2006_s18  }
 0x220   : > { %s1584_s25 = scalar_lea.sflag [#allocation6], %s1583_s24 }
 0x221   : > { %p1730_p7 = pnand %p1733_p6, %p2109_p8 }
 0x223   : > { %p1731_p9 = pneg %p1730_p7 }
 0x225   : > { %2001 = dma.done.wait (%p1731_p9), %s1584_s25, 512  }
 0x226   : > { %2003 = vsyncadd (%p1731_p9), %s1584_s25, 4294966784  ;;  %s19_s23 = sadd.s32 1, %s2026_s23   ;;  %s3269_s18 = smov %s2010_s19 }
 0x227   : > { %p16_p10 = scmp.ge.s32.totalorder %s19_s23, 4   ;;  %s3270_s19 = smov %s2014_s20 }
 0x228   : > { %s3271_s20 = smov %s2115_s6  ;;  %s3272_s21 = smov %s2022_s22 }
 0x229   : > { %s3273_s22 = smov %s3275_s26  ;;  %18 = sbr.rel (!%p16_p10) target bundleno = 4 (0x4), region = 102 }
 0x22e   :  { %1606 = vsyncpa [#allocation6], 1 }
 0x22f   :  { %1608 = vsyncpa [#allocation6 + $0x1], 1 }

</bundles_post_ra>
